<compile_context>
chip_gen: v7x
topology: tpu7x:2x2x1
jax: 0.10.0
libtpu: 0.0.40
codegen_flags: <defaults>
</compile_context>

<pallas_src>
import jax
import jax.numpy as jnp
import numpy as np
from jax.experimental import pallas as pl
from jax.experimental.pallas import tpu as pltpu

_LANE = 128
_TK = 256      # feature (contraction) tile: multiple of 256 (v6e/v7x MXU) and 128 (v5e)


def _round_up(v, m):
    return (v + m - 1) // m * m


def _pick_row_tile(np_pad, max_row_tile=None):
    """Largest 128-multiple divisor of np_pad whose Gram + epilogue temps fit ~40 MiB."""
    budget_elems = (40 << 20) // (8 * 4)          # ~8 live f32 copies of (tq, np_pad)
    for t in (np_pad, 1024, 512, 256, 128):
        if max_row_tile is not None and t > max_row_tile:
            continue
        if t <= np_pad and t % _LANE == 0 and np_pad % t == 0 and t * np_pad <= budget_elems:
            return t
    return _LANE


def _angproto_kernel(wb_ref, n_ref, xc_ref, lr_ref, lc_ref,
                     num_ref, den_ref, gram_acc, rsq_acc, csq_acc):
    """One (row-tile i, feature-tile k) grid step."""
    i = pl.program_id(0)
    k = pl.program_id(1)
    nk = pl.num_programs(1)
    tq, np_pad = gram_acc.shape

    @pl.when(k == 0)
    def _init():
        gram_acc[...] = jnp.zeros_like(gram_acc)
        rsq_acc[...] = jnp.zeros_like(rsq_acc)
        csq_acc[...] = jnp.zeros_like(csq_acc)

    # Single x stream: the full-column block; the row-tile LHS is an aligned
    # sublane slice of the same VMEM block (no second HBM stream).
    xc = xc_ref[...]                                   # (NP, TK)  all rows (= sim columns)
    row_start = pl.multiple_of(i * tq, _LANE)
    xr = xc_ref[pl.ds(row_start, tq), :]               # (TQ, TK)  rows of this tile

    # Gram block on the MXU: bf16 operands, f32 accumulation, contraction on the
    # trailing dim of both operands (no explicit transpose of the RHS).
    gram_acc[...] += jax.lax.dot_general(
        xr.astype(jnp.bfloat16), xc.astype(jnp.bfloat16),
        dimension_numbers=(((1,), (1,)), ((), ())),
        preferred_element_type=jnp.float32)

    # Squared-norm partial sums, kept in f32.
    xrf = xr.astype(jnp.float32)
    xcf = xc.astype(jnp.float32)
    rsq_acc[...] += jnp.sum(xrf * xrf, axis=1, keepdims=True)           # (TQ, 1)
    # Column sums of xc*xc via an MXU matmul with a ones LHS so the column norms
    # land lane-major ((8, NP), all 8 rows identical) - avoids an (N,1)->(1,N)
    # transpose in the epilogue.
    ones8 = jnp.ones((8, xcf.shape[1]), jnp.float32)
    csq_acc[...] += jax.lax.dot_general(
        ones8, xcf * xcf,
        dimension_numbers=(((1,), (1,)), ((), ())),
        preferred_element_type=jnp.float32)

    @pl.when(k == nk - 1)
    def _finalize():
        half_w = wb_ref[0] * 0.5
        n_real = n_ref[0]

        # cosine_sim_ij = gram_ij / (||x_i|| ||x_j||).  Original logits are
        # ((1+sim)/2)*w + b; the row-constant (w/2 + b) cancels under log_softmax,
        # so only sim * (w/2) is needed (fold the scale into the row factor).
        inv_r = jax.lax.rsqrt(jnp.maximum(rsq_acc[...], 1e-24)) * half_w   # (TQ, 1)
        inv_c = jax.lax.rsqrt(jnp.maximum(csq_acc[0:1, :], 1e-24))         # (1, NP)
        pred = gram_acc[...] * inv_r * inv_c                               # (TQ, NP)

        # Mask padded columns out of the row softmax.
        col_idx = jax.lax.broadcasted_iota(jnp.int32, (1, np_pad), 1)
        col_valid = col_idx < n_real
        pred = jnp.where(col_valid, pred, jnp.float32(-1e30))

        m = jnp.max(pred, axis=1, keepdims=True)                           # (TQ, 1)
        lse = jnp.log(jnp.sum(jnp.exp(pred - m), axis=1, keepdims=True))   # (TQ, 1)

        # targets[i, j] = 1 iff label_i == label_j (eye + same-label permutations),
        # restricted to real (un-padded) rows / columns, built in-kernel.
        row_idx = jax.lax.broadcasted_iota(jnp.int32, (tq, 1), 0) + i * tq
        row_valid = row_idx < n_real
        tgt = jnp.logical_and(lr_ref[...] == lc_ref[...],
                              jnp.logical_and(row_valid, col_valid)
                              ).astype(jnp.float32)                        # (TQ, NP)

        row_t = jnp.sum(tgt, axis=1, keepdims=True)                        # (TQ, 1)
        # sum(tgt * log_softmax(pred)) without materializing logp:
        #   = sum(tgt*pred) - sum_i rowsum(tgt)_i * (m_i + lse_i)
        num = jnp.sum(tgt * pred) - jnp.sum(row_t * (m + lse))
        den = jnp.sum(row_t)

        num_ref[...] = jnp.full(num_ref.shape, num, jnp.float32)
        den_ref[...] = jnp.full(den_ref.shape, den, jnp.float32)


def angproto_loss4(x, label, w=20.0, b=-15.0, max_row_tile=None):
    """Forward of AngProtoLoss4 (default config). x: (N, C, H, W); label: (N,) int."""
    n = int(x.shape[0])
    x2 = x.reshape(n, -1)
    d = int(x2.shape[1])
    assert d >= 2
    if x2.dtype not in (jnp.float32, jnp.bfloat16):
        x2 = x2.astype(jnp.float32)          # keep bf16 activations in bf16 (half the x DMA)

    # Lane-dense padded shapes.
    np_pad = _round_up(max(n, 8), _LANE)
    dp = _round_up(d, _TK)
    tq = _pick_row_tile(np_pad, max_row_tile)
    nt = np_pad // tq
    nk = dp // _TK

    if (np_pad, dp) == (n, d):
        x_pad = x2
    else:
        x_pad = jnp.zeros((np_pad, dp), x2.dtype).at[:n, :d].set(x2)

    lbl = label.reshape(n).astype(jnp.int32)
    lbl_pad = jnp.full((np_pad,), -1, jnp.int32).at[:n].set(lbl)
    lbl_rows = lbl_pad.reshape(np_pad, 1)
    lbl_cols = lbl_pad.reshape(1, np_pad)

    wb = jnp.asarray([w, b], dtype=jnp.float32)      # b cancels under log_softmax
    n_real = jnp.asarray([n], dtype=jnp.int32)

    # Explicit VMEM budget (double-buffered x column block + scratch + epilogue
    # temps + label blocks + outputs), capped at v7x's 64 MiB physical VMEM.
    itb = x_pad.dtype.itemsize
    est = (2 * np_pad * _TK * itb                            # x column block (double-buffered)
           + 8 * tq * np_pad * 4                             # Gram scratch + epilogue temps
           + 8 * np_pad * 4 + tq * _LANE * 4                 # norm scratch (lane-padded)
           + 2 * 8 * np_pad * 4 + 2 * tq * _LANE * 4         # label blocks (lane/sublane padded)
           + 4 * 8 * _LANE * 4)                              # outputs (double-buffered)
    vmem_limit = int(min(max(est + (4 << 20), 32 << 20), 64 << 20))

    num_out, den_out = pl.pallas_call(
        _angproto_kernel,
        out_shape=(jax.ShapeDtypeStruct((nt, 8, _LANE), jnp.float32),
                   jax.ShapeDtypeStruct((nt, 8, _LANE), jnp.float32)),
        grid=(nt, nk),
        in_specs=[
            pl.BlockSpec(memory_space=pltpu.MemorySpace.SMEM),     # (w, b) scalars
            pl.BlockSpec(memory_space=pltpu.MemorySpace.SMEM),     # n_real
            pl.BlockSpec((np_pad, _TK), lambda i, k: (0, k)),      # x, all rows (sim columns)
            pl.BlockSpec((tq, 1), lambda i, k: (i, 0)),            # labels, row layout
            pl.BlockSpec((1, np_pad), lambda i, k: (0, 0)),        # labels, col layout
        ],
        out_specs=(
            pl.BlockSpec((1, 8, _LANE), lambda i, k: (i, 0, 0)),
            pl.BlockSpec((1, 8, _LANE), lambda i, k: (i, 0, 0)),
        ),
        scratch_shapes=[
            pltpu.VMEM((tq, np_pad), jnp.float32),   # Gram accumulator
            pltpu.VMEM((tq, 1), jnp.float32),        # row squared norms
            pltpu.VMEM((8, np_pad), jnp.float32),    # column squared norms (lane-major)
        ],
        compiler_params=pltpu.CompilerParams(
            dimension_semantics=("parallel", "arbitrary"),
            vmem_limit_bytes=vmem_limit),
    )(wb, n_real, x_pad, lbl_rows, lbl_cols)

    return -(jnp.sum(num_out[:, 0, 0]) / jnp.sum(den_out[:, 0, 0]))


def _reference(x, label, w=20.0, b=-15.0):
    """Pure-JAX f32 reference of the full PyTorch forward (default config)."""
    n = x.shape[0]
    xf = x.reshape(n, -1).astype(jnp.float32)
    xn = xf / jnp.maximum(jnp.linalg.norm(xf, axis=1, keepdims=True), 1e-12)
    sim = xn @ xn.T
    diag_cos = jnp.sum(xn * xn, axis=1)
    sim = sim - jnp.eye(n) + jnp.diag(diag_cos)
    s = (1.0 + sim) / 2.0
    pred = s * w + b
    logp = jax.nn.log_softmax(pred, axis=1)
    tgt = (label[:, None] == label[None, :]).astype(jnp.float32)
    return -jnp.sum(tgt * logp) / jnp.sum(tgt)


if __name__ == "__main__":
    key = jax.random.PRNGKey(0)
    k1, k2, k3 = jax.random.split(key, 3)

    # Case 1: (N, C, H, W) = (8, 2, 16, 16) -> D = 512; padded N, 2 k-tiles, 1 row tile.
    x1 = jax.random.normal(k1, (8, 2, 16, 16), dtype=jnp.float32)
    lbl1 = jnp.array([0, 1, 0, 2, 1, 3, 2, 0], dtype=jnp.int32)
    out1 = jax.block_until_ready(angproto_loss4(x1, lbl1))
    ref1 = _reference(x1, lbl1)
    # Tolerance accounts for bf16 MXU operands (f32 accumulation) in the kernel.
    np.testing.assert_allclose(np.asarray(out1), np.asarray(ref1), rtol=5e-3, atol=1e-3)

    # Case 2: unaligned N (N=300 -> N_pad=384, single adaptive row tile) and 3 k-tiles.
    x2 = jax.random.normal(k2, (300, 3, 16, 16), dtype=jnp.float32)
    lbl2 = jax.random.randint(k3, (300,), 0, 40, dtype=jnp.int32)
    out2 = jax.block_until_ready(angproto_loss4(x2, lbl2))
    ref2 = _reference(x2, lbl2)
    np.testing.assert_allclose(np.asarray(out2), np.asarray(ref2), rtol=5e-3, atol=1e-3)

    # Case 3: same data, row tiling forced to 128 to exercise the multi-row-tile
    # path (dynamic row slice with non-zero start, per-tile partial reduction).
    out3 = jax.block_until_ready(angproto_loss4(x2, lbl2, max_row_tile=128))
    np.testing.assert_allclose(np.asarray(out3), np.asarray(ref2), rtol=5e-3, atol=1e-3)

    print("KERNEL_OK")
</pallas_src>

<mosaic_0001>
module attributes {stable_mosaic.version = 11 : i64} {
  func.func @_angproto_kernel(%arg0: i32, %arg1: i32, %arg2: memref<2xf32, #tpu.memory_space<smem>>, %arg3: memref<1xi32, #tpu.memory_space<smem>>, %arg4: memref<128x256xf32, #tpu.memory_space<vmem>>, %arg5: memref<128x1xi32, #tpu.memory_space<vmem>>, %arg6: memref<1x128xi32, #tpu.memory_space<vmem>>, %arg7: memref<1x8x128xf32, #tpu.memory_space<vmem>>, %arg8: memref<1x8x128xf32, #tpu.memory_space<vmem>>, %arg9: memref<128x128xf32, #tpu.memory_space<vmem>>, %arg10: memref<128x1xf32, #tpu.memory_space<vmem>>, %arg11: memref<8x128xf32, #tpu.memory_space<vmem>>) attributes {dimension_semantics = [#tpu.dimension_semantics<parallel>, #tpu.dimension_semantics<arbitrary>], iteration_bounds = array<i64: 1, 2>, scalar_prefetch = 0 : i64, scratch_operands = 3 : i64, tpu.core_type = #tpu.core_type<tc>, window_params = [{transform_indices = @transform_0, window_bounds = array<i64: 2>}, {transform_indices = @transform_1, window_bounds = array<i64: 1>}, {transform_indices = @transform_2, window_bounds = array<i64: 128, 256>}, {transform_indices = @transform_3, window_bounds = array<i64: 128, 1>}, {pipeline_mode = #tpu.pipeline_mode<synchronous>, transform_indices = @transform_4, window_bounds = array<i64: 1, 128>}, {transform_indices = @transform_5, window_bounds = array<i64: 1, 8, 128>}, {transform_indices = @transform_6, window_bounds = array<i64: 1, 8, 128>}]} {
    %c0_i32 = arith.constant 0 : i32
    %0 = arith.cmpi eq, %arg1, %c0_i32 : i32
    %1 = arith.extui %0 : i1 to i32
    %c0_i32_0 = arith.constant 0 : i32
    %2 = arith.cmpi ne, %1, %c0_i32_0 : i32
    scf.if %2 {
      %cst_19 = arith.constant 0.000000e+00 : f32
      %29 = vector.broadcast %cst_19 : f32 to vector<128x128xf32>
      %c0_20 = arith.constant 0 : index
      %c0_21 = arith.constant 0 : index
      %30 = vector.load %arg9[%c0_20, %c0_21] : memref<128x128xf32, #tpu.memory_space<vmem>>, vector<128x128xf32>
      tpu.vector_store %arg9[%c0_20, %c0_21], %29 {strides = array<i32>} : memref<128x128xf32, #tpu.memory_space<vmem>>, vector<128x128xf32>,
      %cst_22 = arith.constant 0.000000e+00 : f32
      %31 = vector.broadcast %cst_22 : f32 to vector<128x1xf32>
      %c0_23 = arith.constant 0 : index
      %c0_24 = arith.constant 0 : index
      %32 = vector.load %arg10[%c0_23, %c0_24] : memref<128x1xf32, #tpu.memory_space<vmem>>, vector<128x1xf32>
      tpu.vector_store %arg10[%c0_23, %c0_24], %31 {strides = array<i32>} : memref<128x1xf32, #tpu.memory_space<vmem>>, vector<128x1xf32>,
      %cst_25 = arith.constant 0.000000e+00 : f32
      %33 = vector.broadcast %cst_25 : f32 to vector<8x128xf32>
      %c0_26 = arith.constant 0 : index
      %c0_27 = arith.constant 0 : index
      %34 = vector.load %arg11[%c0_26, %c0_27] : memref<8x128xf32, #tpu.memory_space<vmem>>, vector<8x128xf32>
      tpu.vector_store %arg11[%c0_26, %c0_27], %33 {strides = array<i32>} : memref<8x128xf32, #tpu.memory_space<vmem>>, vector<8x128xf32>,
    } else {
    }
    %c0 = arith.constant 0 : index
    %c0_1 = arith.constant 0 : index
    %3 = vector.load %arg4[%c0, %c0_1] : memref<128x256xf32, #tpu.memory_space<vmem>>, vector<128x256xf32>
    %c128_i32 = arith.constant 128 : i32
    %4 = arith.muli %arg0, %c128_i32 : i32
    %5 = tpu.assume_multiple %4, 128 : i32
    %6 = arith.index_cast %5 : i32 to index
    %c0_2 = arith.constant 0 : index
    %7 = vector.load %arg4[%6, %c0_2] : memref<128x256xf32, #tpu.memory_space<vmem>>, vector<128x256xf32>
    %c0_3 = arith.constant 0 : index
    %c0_4 = arith.constant 0 : index
    %8 = vector.load %arg9[%c0_3, %c0_4] : memref<128x128xf32, #tpu.memory_space<vmem>>, vector<128x128xf32>
    %9 = arith.truncf %7 : vector<128x256xf32> to vector<128x256xbf16>
    %10 = arith.truncf %3 : vector<128x256xf32> to vector<128x256xbf16>
    %cst = arith.constant dense<0.000000e+00> : vector<128x128xf32>
    %11 = tpu.matmul %9, %10, %cst {dimension_numbers = #tpu.dot_dimension_numbers<[1], [1], [0], [0], [0, 0, 1, 0], [], []>} : vector<128x256xbf16>, vector<128x256xbf16>, vector<128x128xf32> -> vector<128x128xf32>
    %12 = arith.addf %8, %11 : vector<128x128xf32>
    %c0_5 = arith.constant 0 : index
    %c0_6 = arith.constant 0 : index
    %13 = vector.load %arg9[%c0_5, %c0_6] : memref<128x128xf32, #tpu.memory_space<vmem>>, vector<128x128xf32>
    tpu.vector_store %arg9[%c0_5, %c0_6], %12 {strides = array<i32>} : memref<128x128xf32, #tpu.memory_space<vmem>>, vector<128x128xf32>,
    %c0_7 = arith.constant 0 : index
    %c0_8 = arith.constant 0 : index
    %14 = vector.load %arg10[%c0_7, %c0_8] : memref<128x1xf32, #tpu.memory_space<vmem>>, vector<128x1xf32>
    %15 = arith.mulf %7, %7 : vector<128x256xf32>
    %cst_9 = arith.constant dense<0.000000e+00> : vector<128xf32>
    %16 = vector.multi_reduction <add>, %15, %cst_9 [1] : vector<128x256xf32> to vector<128xf32>
    %17 = vector.shape_cast %16 : vector<128xf32> to vector<128x1xf32>
    %18 = arith.addf %14, %17 : vector<128x1xf32>
    %c0_10 = arith.constant 0 : index
    %c0_11 = arith.constant 0 : index
    %19 = vector.load %arg10[%c0_10, %c0_11] : memref<128x1xf32, #tpu.memory_space<vmem>>, vector<128x1xf32>
    tpu.vector_store %arg10[%c0_10, %c0_11], %18 {strides = array<i32>} : memref<128x1xf32, #tpu.memory_space<vmem>>, vector<128x1xf32>,
    %cst_12 = arith.constant 1.000000e+00 : f32
    %20 = vector.broadcast %cst_12 : f32 to vector<8x256xf32>
    %c0_13 = arith.constant 0 : index
    %c0_14 = arith.constant 0 : index
    %21 = vector.load %arg11[%c0_13, %c0_14] : memref<8x128xf32, #tpu.memory_space<vmem>>, vector<8x128xf32>
    %22 = arith.mulf %3, %3 : vector<128x256xf32>
    %cst_15 = arith.constant dense<0.000000e+00> : vector<8x128xf32>
    %23 = tpu.matmul %20, %22, %cst_15 {dimension_numbers = #tpu.dot_dimension_numbers<[1], [1], [0], [0], [0, 0, 1, 0], [], []>} : vector<8x256xf32>, vector<128x256xf32>, vector<8x128xf32> -> vector<8x128xf32>
    %24 = arith.addf %21, %23 : vector<8x128xf32>
    %c0_16 = arith.constant 0 : index
    %c0_17 = arith.constant 0 : index
    %25 = vector.load %arg11[%c0_16, %c0_17] : memref<8x128xf32, #tpu.memory_space<vmem>>, vector<8x128xf32>
    tpu.vector_store %arg11[%c0_16, %c0_17], %24 {strides = array<i32>} : memref<8x128xf32, #tpu.memory_space<vmem>>, vector<8x128xf32>,
    %c1_i32 = arith.constant 1 : i32
    %26 = arith.cmpi eq, %arg1, %c1_i32 : i32
    %27 = arith.extui %26 : i1 to i32
    %c0_i32_18 = arith.constant 0 : i32
    %28 = arith.cmpi ne, %27, %c0_i32_18 : i32
    scf.if %28 {
      %c0_19 = arith.constant 0 : index
      %29 = memref.load %arg2[%c0_19] : memref<2xf32, #tpu.memory_space<smem>>
      %cst_20 = arith.constant 5.000000e-01 : f32
      %30 = arith.mulf %29, %cst_20 : f32
      %c0_21 = arith.constant 0 : index
      %31 = memref.load %arg3[%c0_21] : memref<1xi32, #tpu.memory_space<smem>>
      %c0_22 = arith.constant 0 : index
      %c0_23 = arith.constant 0 : index
      %32 = vector.load %arg10[%c0_22, %c0_23] : memref<128x1xf32, #tpu.memory_space<vmem>>, vector<128x1xf32>
      %cst_24 = arith.constant 1.000000e-24 : f32
      %33 = vector.broadcast %cst_24 : f32 to vector<128x1xf32>
      %34 = arith.maximumf %32, %33 : vector<128x1xf32>
      %35 = math.rsqrt %34 : vector<128x1xf32>
      %36 = vector.broadcast %30 : f32 to vector<128x1xf32>
      %37 = arith.mulf %35, %36 : vector<128x1xf32>
      %c0_25 = arith.constant 0 : index
      %c0_26 = arith.constant 0 : index
      %38 = vector.load %arg11[%c0_25, %c0_26] : memref<8x128xf32, #tpu.memory_space<vmem>>, vector<1x128xf32>
      %cst_27 = arith.constant 1.000000e-24 : f32
      %39 = vector.broadcast %cst_27 : f32 to vector<1x128xf32>
      %40 = arith.maximumf %38, %39 : vector<1x128xf32>
      %41 = math.rsqrt %40 : vector<1x128xf32>
      %c0_28 = arith.constant 0 : index
      %c0_29 = arith.constant 0 : index
      %42 = vector.load %arg9[%c0_28, %c0_29] : memref<128x128xf32, #tpu.memory_space<vmem>>, vector<128x128xf32>
      %43 = vector.broadcast %37 : vector<128x1xf32> to vector<128x128xf32>
      %44 = arith.mulf %42, %43 : vector<128x128xf32>
      %45 = vector.broadcast %41 : vector<1x128xf32> to vector<128x128xf32>
      %46 = arith.mulf %44, %45 : vector<128x128xf32>
      %47 = tpu.iota {dimensions = array<i32: 1>} : vector<1x128xi32>
      %48 = vector.broadcast %31 : i32 to vector<1x128xi32>
      %49 = arith.cmpi slt, %47, %48 : vector<1x128xi32>
      %cst_30 = arith.constant -1.000000e+30 : f32
      %50 = vector.shape_cast %49 : vector<1x128xi1> to vector<1x128xi1>
      %51 = vector.broadcast %50 : vector<1x128xi1> to vector<128x128xi1>
      %52 = vector.broadcast %cst_30 : f32 to vector<128x128xf32>
      %53 = arith.select %51, %46, %52 : vector<128x128xi1>, vector<128x128xf32>
      %cst_31 = arith.constant dense<0xFF800000> : vector<128xf32>
      %54 = vector.multi_reduction <maximumf>, %53, %cst_31 [1] : vector<128x128xf32> to vector<128xf32>
      %55 = vector.shape_cast %54 : vector<128xf32> to vector<128x1xf32>
      %56 = vector.broadcast %55 : vector<128x1xf32> to vector<128x128xf32>
      %57 = arith.subf %53, %56 : vector<128x128xf32>
      %58 = math.exp %57 : vector<128x128xf32>
      %cst_32 = arith.constant dense<0.000000e+00> : vector<128xf32>
      %59 = vector.multi_reduction <add>, %58, %cst_32 [1] : vector<128x128xf32> to vector<128xf32>
      %60 = vector.shape_cast %59 : vector<128xf32> to vector<128x1xf32>
      %61 = math.log %60 : vector<128x1xf32>
      %62 = tpu.iota {dimensions = array<i32: 0>} : vector<128x1xi32>
      %c128_i32_33 = arith.constant 128 : i32
      %63 = arith.muli %arg0, %c128_i32_33 : i32
      %64 = vector.broadcast %63 : i32 to vector<128x1xi32>
      %65 = arith.addi %62, %64 : vector<128x1xi32>
      %66 = vector.broadcast %31 : i32 to vector<128x1xi32>
      %67 = arith.cmpi slt, %65, %66 : vector<128x1xi32>
      %c0_34 = arith.constant 0 : index
      %c0_35 = arith.constant 0 : index
      %68 = vector.load %arg5[%c0_34, %c0_35] : memref<128x1xi32, #tpu.memory_space<vmem>>, vector<128x1xi32>
      %c0_36 = arith.constant 0 : index
      %c0_37 = arith.constant 0 : index
      %69 = vector.load %arg6[%c0_36, %c0_37] : memref<1x128xi32, #tpu.memory_space<vmem>>, vector<1x128xi32>
      %70 = vector.broadcast %68 : vector<128x1xi32> to vector<128x128xi32>
      %71 = vector.broadcast %69 : vector<1x128xi32> to vector<128x128xi32>
      %72 = arith.cmpi eq, %70, %71 : vector<128x128xi32>
      %73 = vector.broadcast %67 : vector<128x1xi1> to vector<128x128xi1>
      %74 = vector.broadcast %49 : vector<1x128xi1> to vector<128x128xi1>
      %75 = arith.andi %73, %74 : vector<128x128xi1>
      %76 = arith.andi %72, %75 : vector<128x128xi1>
      %77 = arith.extui %76 : vector<128x128xi1> to vector<128x128xi32>
      %78 = arith.sitofp %77 : vector<128x128xi32> to vector<128x128xf32>
      %cst_38 = arith.constant dense<0.000000e+00> : vector<128xf32>
      %79 = vector.multi_reduction <add>, %78, %cst_38 [1] : vector<128x128xf32> to vector<128xf32>
      %80 = vector.shape_cast %79 : vector<128xf32> to vector<128x1xf32>
      %81 = arith.mulf %78, %53 : vector<128x128xf32>
      %82 = vector.shape_cast %81 : vector<128x128xf32> to vector<1x128x128xf32>
      %cst_39 = arith.constant dense<0.000000e+00> : vector<1xf32>
      %83 = vector.multi_reduction <add>, %82, %cst_39 [1, 2] : vector<1x128x128xf32> to vector<1xf32>
      %84 = vector.shape_cast %83 : vector<1xf32> to vector<1x1x1xf32>
      %85 = vector.extract %84[0, 0, 0] : f32 from vector<1x1x1xf32>
      %86 = arith.addf %55, %61 : vector<128x1xf32>
      %87 = arith.mulf %80, %86 : vector<128x1xf32>
      %88 = vector.shape_cast %87 : vector<128x1xf32> to vector<1x128x1xf32>
      %cst_40 = arith.constant dense<0.000000e+00> : vector<1xf32>
      %89 = vector.multi_reduction <add>, %88, %cst_40 [1, 2] : vector<1x128x1xf32> to vector<1xf32>
      %90 = vector.shape_cast %89 : vector<1xf32> to vector<1x1x1xf32>
      %91 = vector.extract %90[0, 0, 0] : f32 from vector<1x1x1xf32>
      %92 = arith.subf %85, %91 : f32
      %93 = vector.shape_cast %80 : vector<128x1xf32> to vector<1x128x1xf32>
      %cst_41 = arith.constant dense<0.000000e+00> : vector<1xf32>
      %94 = vector.multi_reduction <add>, %93, %cst_41 [1, 2] : vector<1x128x1xf32> to vector<1xf32>
      %95 = vector.shape_cast %94 : vector<1xf32> to vector<1x1x1xf32>
      %96 = vector.extract %95[0, 0, 0] : f32 from vector<1x1x1xf32>
      %97 = vector.broadcast %92 : f32 to vector<1x8x128xf32>
      %c0_42 = arith.constant 0 : index
      %c0_43 = arith.constant 0 : index
      %c0_44 = arith.constant 0 : index
      %98 = vector.load %arg7[%c0_42, %c0_43, %c0_44] : memref<1x8x128xf32, #tpu.memory_space<vmem>>, vector<1x8x128xf32>
      tpu.vector_store %arg7[%c0_42, %c0_43, %c0_44], %97 {strides = array<i32>} : memref<1x8x128xf32, #tpu.memory_space<vmem>>, vector<1x8x128xf32>,
      %99 = vector.broadcast %96 : f32 to vector<1x8x128xf32>
      %c0_45 = arith.constant 0 : index
      %c0_46 = arith.constant 0 : index
      %c0_47 = arith.constant 0 : index
      %100 = vector.load %arg8[%c0_45, %c0_46, %c0_47] : memref<1x8x128xf32, #tpu.memory_space<vmem>>, vector<1x8x128xf32>
      tpu.vector_store %arg8[%c0_45, %c0_46, %c0_47], %99 {strides = array<i32>} : memref<1x8x128xf32, #tpu.memory_space<vmem>>, vector<1x8x128xf32>,
    } else {
    }
    return
  }
  func.func @transform_0(%arg0: i32, %arg1: i32) -> i32 {
    %c0_i32 = arith.constant 0 : i32
    %c0_i32_0 = arith.constant 0 : i32
    return %c0_i32 : i32
  }
  func.func @transform_1(%arg0: i32, %arg1: i32) -> i32 {
    %c0_i32 = arith.constant 0 : i32
    %c0_i32_0 = arith.constant 0 : i32
    return %c0_i32 : i32
  }
  func.func @transform_2(%arg0: i32, %arg1: i32) -> (i32, i32) {
    %c0_i32 = arith.constant 0 : i32
    %c0_i32_0 = arith.constant 0 : i32
    return %c0_i32, %arg1 : i32, i32
  }
  func.func @transform_3(%arg0: i32, %arg1: i32) -> (i32, i32) {
    %c0_i32 = arith.constant 0 : i32
    %c0_i32_0 = arith.constant 0 : i32
    return %arg0, %c0_i32 : i32, i32
  }
  func.func @transform_4(%arg0: i32, %arg1: i32) -> (i32, i32) {
    %c0_i32 = arith.constant 0 : i32
    %c0_i32_0 = arith.constant 0 : i32
    %c0_i32_1 = arith.constant 0 : i32
    return %c0_i32, %c0_i32_0 : i32, i32
  }
  func.func @transform_5(%arg0: i32, %arg1: i32) -> (i32, i32, i32) {
    %c0_i32 = arith.constant 0 : i32
    %c0_i32_0 = arith.constant 0 : i32
    %c0_i32_1 = arith.constant 0 : i32
    return %arg0, %c0_i32, %c0_i32_0 : i32, i32, i32
  }
  func.func @transform_6(%arg0: i32, %arg1: i32) -> (i32, i32, i32) {
    %c0_i32 = arith.constant 0 : i32
    %c0_i32_0 = arith.constant 0 : i32
    %c0_i32_1 = arith.constant 0 : i32
    return %arg0, %c0_i32, %c0_i32_0 : i32, i32, i32
  }
}

</mosaic_0001>

<bundles_post_ra>
// kernel: tpu_custom_call.1
= control target key start
LH: loop header
LB: loop body
LE: loop exit
PB: predicated region body
PF: predicated region fallthrough
CT: control target
= control target key end

     0   :  { %s3020_s0 = inlined_call_operand.vmem [shape: f32[2], index: 0, kind: input, shape index: {}]   ;;  %s3021_s1 = inlined_call_operand.<no memory space> [shape: s32[1], index: 1, kind: input, shape index: {}]   ;;  %s3022_s2 = inlined_call_operand.hbm [shape: f32[128,512], index: 2, kind: input, shape index: {}]   ;;  %s3023_s3 = inlined_call_operand.vmem [shape: s32[128,1], index: 3, kind: input, shape index: {}]   ;;  %s3024_s4 = inlined_call_operand.vmem [shape: s32[1,128], index: 4, kind: input, shape index: {}]   ;;  %s3025_s5 = inlined_call_operand.hbm [shape: f32[1,8,128], index: 5, kind: output, shape index: {0}]   ;;  %s3026_s6 = inlined_call_operand.hbm [shape: f32[1,8,128], index: 6, kind: output, shape index: {1}]  }
   0x1   :  { %12 = sst [smem:[#allocation5]] %s3021_s1 }
   0x2   :  { %13 = vsyncpa [#allocation9], 0 }
   0x3   :  { %14 = vsyncpa [#allocation7], 0 }
   0x4   :  { %16 = vsyncpa [#allocation7 + $0x1], 0 }
   0x5   :  { %17 = vsyncpa [#allocation8], 0 }
   0x6   :  { %18 = vsyncpa [#allocation13], 0  ;;  %s2227_s23 = smov 0   ;;  %s2229_s24 = smov 0  }
   0x7   :  { %s2231_s25 = smov 0   ;;  %s2233_s26 = smov 0  }
   0x8   :  { %s2235_s27 = smov 0   ;;  %s2237_s28 = smov 0  }
   0x9 LB: > { %s1755_s1 = sadd.s32 4294967295, %s2176_s28   ;;  %s85_s29 = sadd.s32 1, %s2164_s25  ;;  %s2176_s28 = sphi %s2237_s28, %s24_s28   ;;  %s2172_s27 = sphi %s2235_s27, %s3044_s27   ;;  %s2168_s26 = sphi %s2233_s26, %s3043_s26   ;;  %s2164_s25 = sphi %s2231_s25, %s3042_s25   ;;  %s2160_s24 = sphi %s2229_s24, %s3041_s24   ;;  %s2156_s23 = sphi %s2227_s23, %s3040_s23  }
   0xa   : > { %p92_p0 = scmp.ne.s32.totalorder %s2164_s25, %s2160_s24  ;;  %p93_p1 = scmp.eq.s32.totalorder %s2176_s28, 0 }
   0xb   : > { %p98_p2 = scmp.ne.s32.totalorder %s2160_s24, %s2156_s23  ;;  %p2263_p3 = scmp.eq.s32.totalorder %s1755_s1, 0 }
   0xc   : > { %p94_p4 = por %p93_p1, %p92_p0  ;;  %p1756_p5 = scmp.ge.s32.totalorder %s2176_s28, 1 }
   0xd   : > { %p2270_p6 = por %p2263_p3, %p98_p2  ;;  %p208_p7 = scmp.lt.s32.totalorder %s2176_s28, 3 }
   0xe   : > { %s221_s10 = sshll.u32 %s3020_s0, 4  ;;  %p1853_p10 = scmp.lt.s32.totalorder %s2176_s28, 2  ;;  %s222_s10 = int_to_ptr.vmem [resolvable:$true] %s221_s10 }
   0xf   : > { %s3030_s7 = scalar_select %p2270_p6, 1, 0 }
  0x10   : > { %p2278_p8 = pnand %p1756_p5, %p208_p7  ;;  %s247_s12 = sand.u32 1, %s2164_s25  }
  0x11   : > { %p2288_p12 = pnand %p1853_p10, %p94_p4  ;;  %s2017_s14 = scalar_lea.vmem %s222_s10, 16 }
  0x12   : > { %s3031_s11 = scalar_select %p2278_p8, 1, 0 }
  0x13   : > { %p1844_p9 = pneg %p2278_p8  ;;  %p2018_p13 = scmp.ne.s32.totalorder %s222_s10, %s2017_s14 }
  0x14   : > { %p2025_p5 = scmp.lt.s32.totalorder %s222_s10, %s222_s10  ;;  %p2026_p7 = scmp.lt.s32.totalorder %s2017_s14, %s2017_s14 }
  0x15   : > { %p1845_p11 = pnand %p1844_p9, %p2263_p3 }
  0x16   : > { %p2027_p6 = por %p2026_p7, %p2025_p5 }
  0x17   : > { %p2019_p0 = pneg %p1845_p11 }
  0x19   : > { %p2020_p1 = pnand %p2019_p0, %p2018_p13 }
  0x1b   : > { %p2021_p2 = pneg %p2020_p1 }
  0x1d   : > { %p2028_p8 = pnand %p2027_p6, %p2021_p2 }
  0x1f   : > { %2031 = shalt.err (!%p2028_p8)
}
  0x20   : > { %s2178_s15 = smov [#allocation6]   ;;  %s33_s16 = sadd.s32 1, %s2172_s27 }
  0x21   : > { %1847 = dma.vmem_to_smem (!%p1845_p11), %s222_s10, 16, %s2178_s15, [#allocation9]  }
  0x22   : > { %s1760_s17 = sshll.u32 %s247_s12, 8  ;;  %p34_p4 = scmp.ge.s32.totalorder %s33_s16, 2 }
  0x23   : > { %s1791_s18 = sshll.u32 %s2172_s27, 8  ;;  %s251_s19 = scalar_lea.vmem [#allocation10], %s1760_s17 }
  0x24   : > { %s258_s20 = sshll.u32 %s251_s19, 4  ;;  %s3046_s16 = smov (%p34_p4, %s33_s16), 0  ;;  %s2301_s20 = int_to_ptr.vmem [resolvable:$true] %s258_s20 }
  0x25   : > { %s2299_s23 = scalar_lea.hbm %s3022_s2, %s1791_s18  ;;  %s82_s8 = ssub.s32 %s2172_s27, %s3046_s16 }
  0x26   : > { %p83_p6 = scmp.eq.s32.totalorder %s82_s8, 0  ;;  %s2310_s10 = scalar_lea.sflag [#allocation7], %s247_s12 }
  0x27   : > { %s2032_s14 = scalar_lea.hbm %s2299_s23, 4096  ;;  %p2034_p9 = pneg %p2288_p12 }
  0x28   : > { %s2308_s9 = scalar_select %p83_p6, %s2164_s25, %s85_s29  }
  0x29   : > { %p2033_p8 = scmp.ne.s32.totalorder %s2299_s23, %s2032_s14  ;;  %s2037_s18 = scalar_lea.hbm %s3022_s2, 8192 }
  0x2a   : > { %p2038_p13 = scmp.lt.u32.totalorder %s2299_s23, %s3022_s2  ;;  %p2039_p0 = scmp.lt.u32.totalorder %s2037_s18, %s2032_s14 }
  0x2b   : > { %p2035_p10 = pnand %p2034_p9, %p2033_p8  ;;  %p2041_p2 = scmp.lt.u32.totalorder %s2032_s14, %s2299_s23 }
  0x2c   : > { %p2040_p1 = por %p2039_p0, %p2038_p13 }
  0x2d   : > { %p2036_p11 = pneg %p2035_p10 }
  0x2e   : > { %p2042_p5 = por %p2041_p2, %p2040_p1 }
  0x30   : > { %p2043_p7 = pnand %p2042_p5, %p2036_p11 }
  0x32   : > { %2046 = shalt.err (!%p2043_p7)
}
  0x33   : > { %s2047_s29 = scalar_lea.vmem %s2301_s20, 4096  ;;  %s2179_s12 = smov [#allocation10]  }
  0x34   : > { %p2048_p4 = scmp.ne.s32.totalorder %s2301_s20, %s2047_s29  ;;  %s2052_s22 = sshll.u32 %s2179_s12, 4  ;;  %s2053_s22 = int_to_ptr.vmem [resolvable:$false] %s2052_s22 }
  0x35   : > { %s2054_s8 = scalar_lea.vmem %s2053_s22, 8192  ;;  %p2055_p10 = scmp.lt.s32.totalorder %s2301_s20, %s2053_s22 }
  0x36   : > { %p2050_p6 = pnand %p2048_p4, %p2034_p9  ;;  %p2056_p13 = scmp.lt.s32.totalorder %s2054_s8, %s2047_s29 }
  0x38   : > { %p2051_p8 = pneg %p2050_p6  ;;  %p2057_p0 = por %p2056_p13, %p2055_p10 }
  0x3a   : > { %p2058_p1 = pnand %p2057_p0, %p2051_p8 }
  0x3c   : > { %2061 = shalt.err (!%p2058_p1)
}
  0x3d   : > { %s2180_s14 = smov 512   ;;  %s2181_s15 = smov 256  }
  0x3e   : > { %s2182_s17 = smov 16   ;;  %p3033_p9 = scmp.ne.s32.totalorder %s3031_s11, 0 }
  0x3f   : > { %1851 = dma.hbm_to_vmem [thread:$0]  (!%p2288_p12), %s2299_s23, 4096, %s2301_s20, %s2310_s10, %s2180_s14, %s2181_s15, %s2182_s17  }
  0x40   : > { %270 = sbr.rel (%p3033_p9) target bundleno = 1166 (0x48e), region = 40 }
  0x47   : > { %2139 = dma.done.wait (%p2263_p3), [#allocation9], 16  }
  0x48   : > { %2141 = vsyncadd (%p2263_p3), [#allocation9], 4294967280  ;;  %s276_s18 = sand.u32 1, %s2160_s24   ;;  %p3034_p11 = scmp.ne.s32.totalorder %s3030_s7, 0 }
  0x49   : > { %s1765_s19 = sshll.u32 %s276_s18, 8  ;;  %s277_s21 = scalar_lea.sflag [#allocation7], %s276_s18 }
  0x4a   : > { %s2345_s29 = scalar_lea.vmem [#allocation10], %s1765_s19 }
  0x4b   : > { %2143 = dma.done.wait (%p3034_p11), %s277_s21, 4096  }
  0x4c   : > { %2145 = vsyncadd (%p3034_p11), %s277_s21, 4294963200 }
  0x4d   : > { %285 = sfence }
  0x4e   : > { %p1766_p12 = scmp.ne.s32.totalorder %s2168_s26, 0 }
  0x4f   : > { %vm338_vm0 = vcmask (!%p1766_p12), 7168   ;;  %v2183_v0 = vmov (!%p1766_p12), 0.0  }
  0x50   : > { %321 = sbr.rel (%p1766_p12) target bundleno = 97 (0x61), region = 52  ;;  %322 = vst [vmem:[#allocation2] sm:$0xff] (!%p1766_p12), %v2183_v0  ;;  %323 = vst [vmem:[#allocation2 + $0x8] sm:$0xff] (!%p1766_p12), %v2183_v0 }
  0x51   : > { %324 = vst [vmem:[#allocation2 + $0x10] sm:$0xff] (!%p1766_p12), %v2183_v0  ;;  %325 = vst [vmem:[#allocation2 + $0x18] sm:$0xff] (!%p1766_p12), %v2183_v0 }
  0x52   : > { %326 = vst [vmem:[#allocation2 + $0x20] sm:$0xff] (!%p1766_p12), %v2183_v0  ;;  %327 = vst [vmem:[#allocation2 + $0x28] sm:$0xff] (!%p1766_p12), %v2183_v0 }
  0x53   : > { %328 = vst [vmem:[#allocation2 + $0x30] sm:$0xff] (!%p1766_p12), %v2183_v0  ;;  %329 = vst [vmem:[#allocation2 + $0x38] sm:$0xff] (!%p1766_p12), %v2183_v0 }
  0x54   : > { %330 = vst [vmem:[#allocation2 + $0x40] sm:$0xff] (!%p1766_p12), %v2183_v0  ;;  %331 = vst [vmem:[#allocation2 + $0x48] sm:$0xff] (!%p1766_p12), %v2183_v0 }
  0x55   : > { %332 = vst [vmem:[#allocation2 + $0x50] sm:$0xff] (!%p1766_p12), %v2183_v0  ;;  %333 = vst [vmem:[#allocation2 + $0x58] sm:$0xff] (!%p1766_p12), %v2183_v0 }
  0x56   : > { %334 = vst [vmem:[#allocation2 + $0x60] sm:$0xff] (!%p1766_p12), %v2183_v0  ;;  %335 = vst [vmem:[#allocation2 + $0x68] sm:$0xff] (!%p1766_p12), %v2183_v0 }
  0x57   : > { %336 = vst [vmem:[#allocation2 + $0x70] sm:$0xff] %v2183_v0  ;;  %337 = vst [vmem:[#allocation2 + $0x78] sm:$0xff] %v2183_v0 }
  0x58   : > { %355 = vst [vmem:[#allocation4] sm:$0xff] %v2183_v0  ;;  %339 = vst.msk [vmem:[#allocation3] sm:$0xff] %vm338_vm0, %v2183_v0 }
  0x59   : > { %340 = vst.msk [vmem:[#allocation3 + $0x8] sm:$0xff] %vm338_vm0, %v2183_v0  ;;  %341 = vst.msk [vmem:[#allocation3 + $0x10] sm:$0xff] %vm338_vm0, %v2183_v0 }
  0x5a   : > { %342 = vst.msk [vmem:[#allocation3 + $0x18] sm:$0xff] %vm338_vm0, %v2183_v0  ;;  %343 = vst.msk [vmem:[#allocation3 + $0x20] sm:$0xff] %vm338_vm0, %v2183_v0 }
  0x5b   : > { %344 = vst.msk [vmem:[#allocation3 + $0x28] sm:$0xff] %vm338_vm0, %v2183_v0  ;;  %345 = vst.msk [vmem:[#allocation3 + $0x30] sm:$0xff] %vm338_vm0, %v2183_v0 }
  0x5c   : > { %346 = vst.msk [vmem:[#allocation3 + $0x38] sm:$0xff] %vm338_vm0, %v2183_v0  ;;  %347 = vst.msk [vmem:[#allocation3 + $0x40] sm:$0xff] %vm338_vm0, %v2183_v0 }
  0x5d   : > { %348 = vst.msk [vmem:[#allocation3 + $0x48] sm:$0xff] %vm338_vm0, %v2183_v0  ;;  %349 = vst.msk [vmem:[#allocation3 + $0x50] sm:$0xff] %vm338_vm0, %v2183_v0 }
  0x5e   : > { %350 = vst.msk [vmem:[#allocation3 + $0x58] sm:$0xff] %vm338_vm0, %v2183_v0  ;;  %351 = vst.msk [vmem:[#allocation3 + $0x60] sm:$0xff] %vm338_vm0, %v2183_v0 }
  0x5f   : > { %352 = vst.msk [vmem:[#allocation3 + $0x68] sm:$0xff] %vm338_vm0, %v2183_v0  ;;  %353 = vst.msk [vmem:[#allocation3 + $0x70] sm:$0xff] %vm338_vm0, %v2183_v0 }
  0x60   : > { %354 = vst.msk [vmem:[#allocation3 + $0x78] sm:$0xff] %vm338_vm0, %v2183_v0 }
  0x61 PF: > { %v357_v1 = vld [vmem:[%s2345_s29 + $0x8] sm:$0xff]  ;;  %v359_v2 = vld [vmem:[%s2345_s29 + $0x18] sm:$0xff]  ;;  %v356_v3 = vld [vmem:[%s2345_s29] sm:$0xff]  ;;  %v2184_v11 = vmov 1.0   ;;  %vm715_vm1 = vcmask 7168   ;;  %p1767_p3 = scmp.ne.s32.totalorder %s2168_s26, 1 }
  0x62   : > { %v459_v4 = vpack.c.bf16 %v359_v2, %v357_v1  ;;  %v358_v5 = vld [vmem:[%s2345_s29 + $0x10] sm:$0xff]  ;;  %v361_v6 = vld [vmem:[%s2345_s29 + $0x28] sm:$0xff]  ;;  %v363_v7 = vld [vmem:[%s2345_s29 + $0x38] sm:$0xff]  ;;  %v734_v8 = vmul.f32 %v357_v1, %v357_v1  ;;  %v736_v9 = vmul.f32 %v359_v2, %v359_v2  ;;  %v733_v10 = vmul.f32 %v356_v3, %v356_v3  ;;  %829 = vmatprep.mubr.f32.mxu1 %v2184_v11  ;;  %s2459_s30 = sld [smem:[#allocation6]] (!%p1767_p3) }
  0x63   : > { %v2375_v12 = vpack.c.bf16 %v358_v5, %v356_v3  ;;  %v2377_v13 = vpack.c.bf16 %v363_v7, %v361_v6  ;;  %v735_v14 = vmul.f32 %v358_v5, %v358_v5  ;;  %v738_v15 = vmul.f32 %v361_v6, %v361_v6  ;;  %v360_v19 = vld [vmem:[%s2345_s29 + $0x20] sm:$0xff]  ;;  %v362_v20 = vld [vmem:[%s2345_s29 + $0x30] sm:$0xff]  ;;  %v365_v22 = vld [vmem:[%s2345_s29 + $0x48] sm:$0xff]  ;;  %s843_s15 = sld [smem:[#allocation5]] (!%p1767_p3) }
  0x64   : > { %474 = vmatprep.subr.bf16.mxu0 %v459_v4  ;;  %v1792_v16 = vpack.c.bf16 %v736_v9, %v734_v8  ;;  %506 = vmatprep.mubr.bf16.mxu0 %v459_v4  ;;  %v740_v17 = vmul.f32 %v363_v7, %v363_v7  ;;  %v367_v23 = vld [vmem:[%s2345_s29 + $0x58] sm:$0xff]  ;;  %v737_v24 = vmul.f32 %v360_v19, %v360_v19  ;;  %v364_v32 = vld [vmem:[%s2345_s29 + $0x40] sm:$0xff]  ;;  %v366_v33 = vld [vmem:[%s2345_s29 + $0x50] sm:$0xff] }
  0x65   : > { %475 = vmatpush1.bf16.xpose.msra.mxu0 %v2375_v12  ;;  %v1794_v18 = vpack.c.bf16 %v735_v14, %v733_v10  ;;  %v739_v25 = vmul.f32 %v362_v20, %v362_v20  ;;  %v742_v26 = vmul.f32 %v365_v22, %v365_v22  ;;  %v744_v27 = vmul.f32 %v367_v23, %v367_v23  ;;  %v369_v34 = vld [vmem:[%s2345_s29 + $0x68] sm:$0xff]  ;;  %v371_v35 = vld [vmem:[%s2345_s29 + $0x78] sm:$0xff]  ;;  %v368_v48 = vld [vmem:[%s2345_s29 + $0x60] sm:$0xff] }
  0x66   : > { %476 = vmatprep.subr.bf16.mxu0 %v2377_v13  ;;  %1793 = vmatprep.subr.bf16.mxu1 %v1792_v16  ;;  %v1796_v21 = vpack.c.bf16 %v740_v17, %v738_v15  ;;  %v2385_v28 = vpack.c.bf16 %v362_v20, %v360_v19  ;;  %v2387_v29 = vpack.c.bf16 %v367_v23, %v365_v22  ;;  %v370_v49 = vld [vmem:[%s2345_s29 + $0x70] sm:$0xff]  ;;  %v373_v50 = vld [vmem:[%s2345_s29 + $0x88] sm:$0xff]  ;;  %v375_v51 = vld [vmem:[%s2345_s29 + $0x98] sm:$0xff] }
  0x67   : > { %1795 = vmatpush1.bf16.xpose.msra.mxu1 %v1794_v18  ;;  %v1798_v30 = vpack.c.bf16 %v739_v25, %v737_v24  ;;  %v1800_v31 = vpack.c.bf16 %v744_v27, %v742_v26  ;;  %v741_v36 = vmul.f32 %v364_v32, %v364_v32  ;;  %v743_v37 = vmul.f32 %v366_v33, %v366_v33  ;;  %v374_v62 = vld [vmem:[%s2345_s29 + $0x90] sm:$0xff]  ;;  %v372_v1 = vld [vmem:[%s2345_s29 + $0x80] sm:$0xff]  ;;  %v377_v4 = vld [vmem:[%s2345_s29 + $0xa8] sm:$0xff] }
  0x68   : > { %1797 = vmatprep.subr.bf16.mxu1 %v1796_v21  ;;  %v746_v38 = vmul.f32 %v369_v34, %v369_v34  ;;  %v748_v39 = vmul.f32 %v371_v35, %v371_v35  ;;  %v2395_v40 = vpack.c.bf16 %v366_v33, %v364_v32  ;;  %v657_v41 = vadd.f32 %v738_v15, %v737_v24  ;;  %v379_v5 = vld [vmem:[%s2345_s29 + $0xb8] sm:$0xff]  ;;  %v378_v7 = vld [vmem:[%s2345_s29 + $0xb0] sm:$0xff]  ;;  %v376_v15 = vld [vmem:[%s2345_s29 + $0xa0] sm:$0xff]  ;;  %s842_s26 = smul.f32 (!%p1767_p3), 0.5, %s2459_s30 }
  0x69   : > { %v2397_v42 = vpack.c.bf16 %v371_v35, %v369_v34  ;;  %v651_v43 = vadd.f32 %v734_v8, %v733_v10  ;;  %v1802_v44 = vpack.c.bf16 %v743_v37, %v741_v36  ;;  %v660_v45 = vadd.f32 %v740_v17, %v739_v25  ;;  %v383_v21 = vld [vmem:[%s2345_s29 + $0xd8] sm:$0xff]  ;;  %v382_v22 = vld [vmem:[%s2345_s29 + $0xd0] sm:$0xff]  ;;  %v381_v25 = vld [vmem:[%s2345_s29 + $0xc8] sm:$0xff] }
  0x6a   : > { %658 = vadd.xlane.f32.xlu1 %v657_v41  ;;  %v1804_v46 = vpack.c.bf16 %v748_v39, %v746_v38  ;;  %v654_v47 = vadd.f32 %v736_v9, %v735_v14  ;;  %v745_v52 = vmul.f32 %v368_v48, %v368_v48  ;;  %v747_v53 = vmul.f32 %v370_v49, %v370_v49  ;;  %v387_v34 = vld [vmem:[%s2345_s29 + $0xf8] sm:$0xff]  ;;  %v386_v35 = vld [vmem:[%s2345_s29 + $0xf0] sm:$0xff] }
  0x6b   : > { %652 = vadd.xlane.f32.xlu0 %v651_v43  ;;  %v666_v54 = vadd.f32 %v744_v27, %v743_v37  ;;  %v750_v55 = vmul.f32 %v373_v50, %v373_v50  ;;  %v752_v56 = vmul.f32 %v375_v51, %v375_v51  ;;  %v663_v57 = vadd.f32 %v742_v26, %v741_v36  ;;  %v380_v26 = vld [vmem:[%s2345_s29 + $0xc0] sm:$0xff] }
  0x6c   : > { %v2405_v58 = vpack.c.bf16 %v370_v49, %v368_v48  ;;  %v2407_v59 = vpack.c.bf16 %v375_v51, %v373_v50  ;;  %v1806_v60 = vpack.c.bf16 %v747_v53, %v745_v52  ;;  %v672_v61 = vadd.f32 %v748_v39, %v747_v53  ;;  %v384_v39 = vld [vmem:[%s2345_s29 + $0xe0] sm:$0xff] }
  0x6d   : > { %477 = vmatpush1.bf16.xpose.msra.mxu0 %v2385_v28  ;;  %v1808_v63 = vpack.c.bf16 %v752_v56, %v750_v55  ;;  %v669_v0 = vadd.f32 %v746_v38, %v745_v52  ;;  %v751_v2 = vmul.f32 %v374_v62, %v374_v62  ;;  %v749_v3 = vmul.f32 %v372_v1, %v372_v1  ;;  %v385_v38 = vld [vmem:[%s2345_s29 + $0xe8] sm:$0xff] }
  0x6e   : > { %478 = vmatprep.subr.bf16.mxu0 %v2387_v29  ;;  %661 = vadd.xlane.f32.xlu1 %v660_v45  ;;  %v754_v8 = vmul.f32 %v377_v4, %v377_v4  ;;  %v756_v9 = vmul.f32 %v379_v5, %v379_v5  ;;  %v2416_v14 = vpack.c.bf16 %v374_v62, %v372_v1  ;;  %v608_v62 = vld [vmem:[#allocation3 + $0x28] sm:$0xff] }
  0x6f   : > { %1799 = vmatpush1.bf16.xpose.msra.mxu1 %v1798_v30  ;;  %655 = vadd.xlane.f32.xlu0 %v654_v47  ;;  %v678_v6 = vadd.f32 %v752_v56, %v751_v2  ;;  %v675_v10 = vadd.f32 %v750_v55, %v749_v3  ;;  %v755_v16 = vmul.f32 %v378_v7, %v378_v7 }
  0x70   : > { %1801 = vmatprep.subr.bf16.mxu1 %v1800_v31  ;;  %v2419_v17 = vpack.c.bf16 %v379_v5, %v377_v4  ;;  %v753_v18 = vmul.f32 %v376_v15, %v376_v15  ;;  %v1810_v19 = vpack.c.bf16 %v751_v2, %v749_v3  ;;  %v1812_v23 = vpack.c.bf16 %v756_v9, %v754_v8  ;;  %v610_v4 = vld [vmem:[#allocation3 + $0x38] sm:$0xff] }
  0x71   : > { %v684_v20 = vadd.f32 %v756_v9, %v755_v16  ;;  %v760_v27 = vmul.f32 %v383_v21, %v383_v21  ;;  %v759_v30 = vmul.f32 %v382_v22, %v382_v22  ;;  %v758_v31 = vmul.f32 %v381_v25, %v381_v25 }
  0x72   : > { %667 = vadd.xlane.f32.xlu1 %v666_v54  ;;  %v681_v24 = vadd.f32 %v754_v8, %v753_v18  ;;  %v757_v32 = vmul.f32 %v380_v26, %v380_v26  ;;  %v468_v37 = vpack.c.bf16 %v378_v7, %v376_v15  ;;  %v764_v41 = vmul.f32 %v387_v34, %v387_v34 }
  0x73   : > { %664 = vadd.xlane.f32.xlu0 %v663_v57  ;;  %v690_v33 = vadd.f32 %v760_v27, %v759_v30  ;;  %v763_v43 = vmul.f32 %v386_v35, %v386_v35  ;;  %v762_v45 = vmul.f32 %v385_v38, %v385_v38  ;;  %v1814_v47 = vpack.c.bf16 %v755_v16, %v753_v18 }
  0x74   : > { %v687_v36 = vadd.f32 %v758_v31, %v757_v32  ;;  %v1816_v49 = vpack.c.bf16 %v760_v27, %v758_v31  ;;  %v470_v51 = vpack.c.bf16 %v382_v22, %v380_v26  ;;  %v473_v52 = vpack.c.bf16 %v387_v34, %v385_v38  ;;  %v615_v26 = vld [vmem:[#allocation3 + $0x60] sm:$0xff] }
  0x75   : > { %479 = vmatpush1.bf16.xpose.msra.mxu0 %v2395_v40  ;;  %v696_v48 = vadd.f32 %v764_v41, %v763_v43  ;;  %v1818_v53 = vpack.c.bf16 %v759_v30, %v757_v32  ;;  %v1820_v54 = vpack.c.bf16 %v764_v41, %v762_v45  ;;  %v472_v55 = vpack.c.bf16 %v386_v35, %v384_v39  ;;  %v617_v35 = vld [vmem:[#allocation3 + $0x70] sm:$0xff] }
  0x76   : > { %480 = vmatprep.subr.bf16.mxu0 %v2397_v42  ;;  %673 = vadd.xlane.f32.xlu1 %v672_v61 }
  0x77   : > { %1803 = vmatpush1.bf16.xpose.msra.mxu1 %v1802_v44  ;;  %670 = vadd.xlane.f32.xlu0 %v669_v0  ;;  %v471_v44 = vpack.c.bf16 %v383_v21, %v381_v25  ;;  %v613_v21 = vld [vmem:[#allocation3 + $0x50] sm:$0xff]  ;;  %v616_v25 = vld [vmem:[#allocation3 + $0x68] sm:$0xff] }
  0x78   : > { %1805 = vmatprep.subr.bf16.mxu1 %v1804_v46  ;;  %v761_v46 = vmul.f32 %v384_v39, %v384_v39  ;;  %v426_v39 = vld [vmem:[#allocation2] sm:$0xff] }
  0x7a   : > { %679 = vadd.xlane.f32.xlu1 %v678_v6  ;;  %v693_v50 = vadd.f32 %v762_v45, %v761_v46  ;;  %v1822_v56 = vpack.c.bf16 %v763_v43, %v761_v46  ;;  %v609_v6 = vld [vmem:[#allocation3 + $0x30] sm:$0xff]  ;;  %v427_v43 = vld [vmem:[#allocation2 + $0x8] sm:$0xff] }
  0x7b   : > { %676 = vadd.xlane.f32.xlu0 %v675_v10  ;;  %v612_v10 = vld [vmem:[#allocation3 + $0x48] sm:$0xff] }
  0x7d   : > { %481 = vmatpush1.bf16.xpose.msra.mxu0 %v2405_v58 }
  0x7e   : > { %482 = vmatprep.subr.bf16.mxu0 %v2407_v59  ;;  %685 = vadd.xlane.f32.xlu1 %v684_v20 }
  0x7f   : > { %1807 = vmatpush1.bf16.xpose.msra.mxu1 %v1806_v60  ;;  %682 = vadd.xlane.f32.xlu0 %v681_v24 }
  0x80   : > { %1809 = vmatprep.subr.bf16.mxu1 %v1808_v63  ;;  %v607_v63 = vld [vmem:[#allocation3 + $0x20] sm:$0xff] }
  0x82   : > { %691 = vadd.xlane.f32.xlu1 %v690_v33  ;;  %v618_v33 = vld [vmem:[#allocation3 + $0x78] sm:$0xff] }
  0x83   : > { %688 = vadd.xlane.f32.xlu0 %v687_v36 }
  0x85   : > { %483 = vmatpush1.bf16.xpose.msra.mxu0 %v2416_v14 }
  0x86   : > { %484 = vmatprep.subr.bf16.mxu0 %v2419_v17  ;;  %697 = vadd.xlane.f32.xlu1 %v696_v48 }
  0x87   : > { %1811 = vmatpush1.bf16.xpose.msra.mxu1 %v1810_v19  ;;  %694 = vadd.xlane.f32.xlu0 %v693_v50  ;;  %v614_v19 = vld [vmem:[#allocation3 + $0x58] sm:$0xff] }
  0x88   : > { %1813 = vmatprep.subr.bf16.mxu1 %v1812_v23 }
  0x8d   : > { %485 = vmatpush1.bf16.xpose.msra.mxu0 %v468_v37 }
  0x8e   : > { %486 = vmatprep.subr.bf16.mxu0 %v471_v44 }
  0x8f   : > { %1815 = vmatpush1.bf16.xpose.msra.mxu1 %v1814_v47 }
  0x90   : > { %1817 = vmatprep.subr.bf16.mxu1 %v1816_v49 }
  0x95   : > { %487 = vmatpush1.bf16.xpose.msra.mxu0 %v470_v51 }
  0x96   : > { %488 = vmatprep.subr.bf16.mxu0 %v473_v52 }
  0x97   : > { %1819 = vmatpush1.bf16.xpose.msra.mxu1 %v1818_v53  ;;  %v428_v53 = vld [vmem:[#allocation2 + $0x10] sm:$0xff] }
  0x98   : > { %1821 = vmatprep.subr.bf16.mxu1 %v1820_v54 }
  0x9d   : > { %489 = vmatpush1.bf16.xpose.msra.mxu0 %v472_v55 }
  0x9f   : > { %1823 = vmatpush1.bf16.xpose.msra.mxu1 %v1822_v56 }
  0xa4   : > { %507 = vmatmul.mubr.bf16.vlgmr.msra.gmra.mrb[0].mxu0 %v2375_v12 }
  0xa5   : > { %514 = vmatprep.mubr.bf16.mxu0 %v2377_v13  ;;  %v603_v13 = vld [vmem:[#allocation3] sm:$0xff] }
  0xa6   : > { %830 = vmatmul.mubr.f32.vlgmr.msra.gmra.mrb[0].mxu1 %v2184_v11  ;;  %v605_v11 = vld [vmem:[#allocation3 + $0x10] sm:$0xff] }
  0xac   : > { %515 = vmatmul.mubr.bf16.gmra.mrb[4].mxu0 %v2385_v28 }
  0xad   : > { %522 = vmatprep.mubr.bf16.mxu0 %v2387_v29 }
  0xb4   : > { %523 = vmatmul.mubr.bf16.gmra.mrb[8].mxu0 %v2395_v40 }
  0xb5   : > { %530 = vmatprep.mubr.bf16.mxu0 %v2397_v42  ;;  %v606_v42 = vld [vmem:[#allocation3 + $0x18] sm:$0xff] }
  0xbc   : > { %531 = vmatmul.mubr.bf16.gmra.mrb[12].mxu0 %v2405_v58  ;;  %v604_v58 = vld [vmem:[#allocation3 + $0x8] sm:$0xff] }
  0xbd   : > { %538 = vmatprep.mubr.bf16.mxu0 %v2407_v59 }
  0xc4   : > { %539 = vmatmul.mubr.bf16.gmra.mrb[16].mxu0 %v2416_v14  ;;  %v611_v14 = vld [vmem:[#allocation3 + $0x40] sm:$0xff] }
  0xc5   : > { %546 = vmatprep.mubr.bf16.mxu0 %v2419_v17 }
  0xcc   : > { %547 = vmatmul.mubr.bf16.gmra.mrb[20].mxu0 %v468_v37 }
  0xcd   : > { %554 = vmatprep.mubr.bf16.mxu0 %v471_v44  ;;  %v732_v44 = vld [vmem:[#allocation4] sm:$0xff] }
  0xd4   : > { %555 = vmatmul.mubr.bf16.gmra.mrb[24].mxu0 %v470_v51 }
  0xd5   : > { %562 = vmatprep.mubr.bf16.mxu0 %v473_v52 }
  0xdc   : > { %563 = vmatmul.mubr.bf16.gmra.mrb[28].mxu0 %v472_v55  ;;  %v429_v55 = vld [vmem:[#allocation2 + $0x18] sm:$0xff] }
  0xf7   : > { %v659_v12 = vpop.xlane.xlu1 %658 }
  0xf8   : > { %v653_v28 = vpop.xlane.xlu0 %652  ;;  %v701_v29 = vadd.f32 %v659_v12, %v605_v11 }
  0xf9   : > { %v699_v40 = vadd.f32 %v653_v28, %v603_v13 }
  0xfa   : > { %718 = vst.msk [vmem:[#allocation3 + $0x10] sm:$0xff] %vm715_vm1, %v701_v29  ;;  %v430_v29 = vld [vmem:[#allocation2 + $0x20] sm:$0xff] }
  0xfb   : > { %716 = vst.msk [vmem:[#allocation3] sm:$0xff] %vm715_vm1, %v699_v40  ;;  %v662_v57 = vpop.xlane.xlu1 %661 }
  0xfc   : > { %v656_v59 = vpop.xlane.xlu0 %655  ;;  %v702_v60 = vadd.f32 %v662_v57, %v606_v42  ;;  %v431_v42 = vld [vmem:[#allocation2 + $0x28] sm:$0xff] }
  0xfd   : > { %v700_v61 = vadd.f32 %v656_v59, %v604_v58 }
  0xfe   : > { %719 = vst.msk [vmem:[#allocation3 + $0x18] sm:$0xff] %vm715_vm1, %v702_v60 }
  0xff   : > { %717 = vst.msk [vmem:[#allocation3 + $0x8] sm:$0xff] %vm715_vm1, %v700_v61  ;;  %v668_v0 = vpop.xlane.xlu1 %667 }
 0x100   : > { %v665_v1 = vpop.xlane.xlu0 %664  ;;  %v704_v2 = vadd.f32 %v668_v0, %v608_v62  ;;  %v432_v62 = vld [vmem:[#allocation2 + $0x30] sm:$0xff]  ;;  %v433_v0 = vld [vmem:[#allocation2 + $0x38] sm:$0xff] }
 0x101   : > { %v703_v3 = vadd.f32 %v665_v1, %v607_v63 }
 0x102   : > { %721 = vst.msk [vmem:[#allocation3 + $0x28] sm:$0xff] %vm715_vm1, %v704_v2 }
 0x103   : > { %720 = vst.msk [vmem:[#allocation3 + $0x20] sm:$0xff] %vm715_vm1, %v703_v3  ;;  %v674_v5 = vpop.xlane.xlu1 %673 }
 0x104   : > { %v671_v7 = vpop.xlane.xlu0 %670  ;;  %v706_v8 = vadd.f32 %v674_v5, %v610_v4 }
 0x105   : > { %v705_v9 = vadd.f32 %v671_v7, %v609_v6  ;;  %v434_v6 = vld [vmem:[#allocation2 + $0x40] sm:$0xff] }
 0x106   : > { %723 = vst.msk [vmem:[#allocation3 + $0x38] sm:$0xff] %vm715_vm1, %v706_v8  ;;  %v435_v8 = vld [vmem:[#allocation2 + $0x48] sm:$0xff] }
 0x107   : > { %722 = vst.msk [vmem:[#allocation3 + $0x30] sm:$0xff] %vm715_vm1, %v705_v9  ;;  %v680_v15 = vpop.xlane.xlu1 %679 }
 0x108   : > { %v677_v16 = vpop.xlane.xlu0 %676  ;;  %v708_v17 = vadd.f32 %v680_v15, %v612_v10 }
 0x109   : > { %v707_v18 = vadd.f32 %v677_v16, %v611_v14 }
 0x10a   : > { %725 = vst.msk [vmem:[#allocation3 + $0x48] sm:$0xff] %vm715_vm1, %v708_v17  ;;  %v436_v17 = vld [vmem:[#allocation2 + $0x50] sm:$0xff] }
 0x10b   : > { %724 = vst.msk [vmem:[#allocation3 + $0x40] sm:$0xff] %vm715_vm1, %v707_v18  ;;  %v686_v20 = vpop.xlane.xlu1 %685 }
 0x10c   : > { %v683_v22 = vpop.xlane.xlu0 %682  ;;  %v710_v23 = vadd.f32 %v686_v20, %v614_v19  ;;  %v437_v19 = vld [vmem:[#allocation2 + $0x58] sm:$0xff] }
 0x10d   : > { %v709_v24 = vadd.f32 %v683_v22, %v613_v21 }
 0x10e   : > { %727 = vst.msk [vmem:[#allocation3 + $0x58] sm:$0xff] %vm715_vm1, %v710_v23 }
 0x10f   : > { %726 = vst.msk [vmem:[#allocation3 + $0x50] sm:$0xff] %vm715_vm1, %v709_v24  ;;  %v692_v27 = vpop.xlane.xlu1 %691 }
 0x110   : > { %v689_v30 = vpop.xlane.xlu0 %688  ;;  %v712_v31 = vadd.f32 %v692_v27, %v616_v25  ;;  %v438_v25 = vld [vmem:[#allocation2 + $0x60] sm:$0xff]  ;;  %v439_v27 = vld [vmem:[#allocation2 + $0x68] sm:$0xff] }
 0x111   : > { %v711_v32 = vadd.f32 %v689_v30, %v615_v26 }
 0x112   : > { %729 = vst.msk [vmem:[#allocation3 + $0x68] sm:$0xff] %vm715_vm1, %v712_v31 }
 0x113   : > { %728 = vst.msk [vmem:[#allocation3 + $0x60] sm:$0xff] %vm715_vm1, %v711_v32  ;;  %v698_v34 = vpop.xlane.xlu1 %697 }
 0x114   : > { %v695_v36 = vpop.xlane.xlu0 %694  ;;  %v714_v37 = vadd.f32 %v698_v34, %v618_v33 }
 0x115   : > { %v713_v38 = vadd.f32 %v695_v36, %v617_v35  ;;  %v440_v35 = vld [vmem:[#allocation2 + $0x70] sm:$0xff] }
 0x116   : > { %731 = vst.msk [vmem:[#allocation3 + $0x78] sm:$0xff] %vm715_vm1, %v714_v37  ;;  %v441_v37 = vld [vmem:[#allocation2 + $0x78] sm:$0xff] }
 0x117   : > { %730 = vst.msk [vmem:[#allocation3 + $0x70] sm:$0xff] %vm715_vm1, %v713_v38 }
 0x177   : > { %v508_v41 = vpop.f32.mrb[0].mxu0 }
 0x178   : > { %v571_v45 = vadd.f32 %v508_v41, %v426_v39  ;;  %v510_v46 = vpop.f32.mrb[1].mxu0 }
 0x179   : > { %v511_v47 = vpop.f32.mrb[2].mxu0  ;;  %v831_v48 = vpop.f32.mrb[0].mxu1  ;;  %v844_v46 = vld [vmem:[#allocation3] sm:$0xff] (!%p1767_p3) }
 0x17a   : > { %587 = vst [vmem:[#allocation2] sm:$0xff] %v571_v45  ;;  %v572_v49 = vadd.f32 %v511_v47, %v427_v43  ;;  %v513_v50 = vpop.f32.mrb[3].mxu0  ;;  %v835_v51 = vadd.f32 %v831_v48, %v732_v44  ;;  %v833_v52 = vpop.f32.mrb[1].mxu1  ;;  %v846_v45 = vld [vmem:[#allocation3 + $0x10] sm:$0xff] (!%p1767_p3)  ;;  %v847_v47 = vld [vmem:[#allocation3 + $0x18] sm:$0xff] (!%p1767_p3)  ;;  %v2185_v48 = vmov (!%p1767_p3), 0  }
 0x17b   : > { %1918 = vset.pattern.permute.xlu1 (!%p1767_p3), %v2185_v48  ;;  %1917 = vset.pattern.permute.xlu0 (!%p1767_p3), %v2185_v48  ;;  %v860_v50 = vmax.f32 (!%p1767_p3), %v844_v46, 1e-24  ;;  %v845_v52 = vld [vmem:[#allocation3 + $0x8] sm:$0xff] (!%p1767_p3) }
 0x17c   : > { %588 = vst [vmem:[#allocation2 + $0x8] sm:$0xff] %v572_v49  ;;  %836 = vst [vmem:[#allocation4] sm:$0xff] %v835_v51  ;;  %v862_v49 = vmax.f32 (!%p1767_p3), %v846_v45, 1e-24  ;;  %v863_v51 = vmax.f32 (!%p1767_p3), %v847_v47, 1e-24 }
 0x17d   : > { %v1260_v47 = vld [vmem:[%s3023_s3] sm:$0xff] (!%p1767_p3)  ;;  %v1261_v48 = vld [vmem:[%s3023_s3 + $0x8] sm:$0xff] (!%p1767_p3) }
 0x17e   : > { %1919 = vrsqrt.f32 (!%p1767_p3), %v862_v49  ;;  %v1262_v49 = vld [vmem:[%s3023_s3 + $0x10] sm:$0xff] (!%p1767_p3) }
 0x17f   : > { %v516_v54 = vpop.f32.mrb[4].mxu0  ;;  %1921 = vrsqrt.f32 (!%p1767_p3), %v860_v50  ;;  %v1264_v50 = vld [vmem:[%s3023_s3 + $0x20] sm:$0xff] (!%p1767_p3) }
 0x180   : > { %v573_v56 = vadd.f32 %v516_v54, %v428_v53  ;;  %v518_v11 = vpop.f32.mrb[5].mxu0  ;;  %v849_v53 = vld [vmem:[#allocation3 + $0x28] sm:$0xff] (!%p1767_p3)  ;;  %v848_v54 = vld [vmem:[#allocation3 + $0x20] sm:$0xff] (!%p1767_p3)  ;;  %1923 = vrsqrt.f32 (!%p1767_p3), %v863_v51  ;;  %v1263_v51 = vld [vmem:[%s3023_s3 + $0x18] sm:$0xff] (!%p1767_p3) }
 0x181   : > { %v519_v12 = vpop.f32.mrb[6].mxu0  ;;  %v864_v11 = vmax.f32 (!%p1767_p3), %v848_v54, 1e-24  ;;  %v1268_v54 = vld [vmem:[%s3023_s3 + $0x40] sm:$0xff] (!%p1767_p3) }
 0x182   : > { %589 = vst [vmem:[#allocation2 + $0x10] sm:$0xff] %v573_v56  ;;  %v574_v13 = vadd.f32 %v519_v12, %v429_v55  ;;  %v521_v28 = vpop.f32.mrb[7].mxu0  ;;  %v861_v55 = vmax.f32 (!%p1767_p3), %v845_v52, 1e-24  ;;  %v865_v56 = vmax.f32 (!%p1767_p3), %v849_v53, 1e-24 }
 0x183   : > { %v851_v12 = vld [vmem:[#allocation3 + $0x38] sm:$0xff] (!%p1767_p3)  ;;  %v1266_v52 = vld [vmem:[%s3023_s3 + $0x30] sm:$0xff] (!%p1767_p3)  ;;  %v1265_v53 = vld [vmem:[%s3023_s3 + $0x28] sm:$0xff] (!%p1767_p3) }
 0x184   : > { %590 = vst [vmem:[#allocation2 + $0x18] sm:$0xff] %v574_v13  ;;  %v850_v13 = vld [vmem:[#allocation3 + $0x30] sm:$0xff] (!%p1767_p3)  ;;  %1925 = vrsqrt.f32 (!%p1767_p3), %v861_v55  ;;  %v867_v28 = vmax.f32 (!%p1767_p3), %v851_v12, 1e-24  ;;  %v1267_v55 = vld [vmem:[%s3023_s3 + $0x38] sm:$0xff] (!%p1767_p3)  ;;  %v1272_v12 = vld [vmem:[%s3023_s3 + $0x60] sm:$0xff] (!%p1767_p3) }
 0x185   : > { %1927 = vrsqrt.f32 (!%p1767_p3), %v865_v56  ;;  %v1270_v56 = vld [vmem:[%s3023_s3 + $0x50] sm:$0xff] (!%p1767_p3) }
 0x186   : > { %1929 = vrsqrt.f32 (!%p1767_p3), %v864_v11  ;;  %v1269_v11 = vld [vmem:[%s3023_s3 + $0x48] sm:$0xff] (!%p1767_p3) }
 0x187   : > { %v524_v40 = vpop.f32.mrb[8].mxu0  ;;  %1931 = vrsqrt.f32 (!%p1767_p3), %v867_v28  ;;  %v1273_v28 = vld [vmem:[%s3023_s3 + $0x68] sm:$0xff] (!%p1767_p3) }
 0x188   : > { %v575_v57 = vadd.f32 %v524_v40, %v430_v29  ;;  %v526_v58 = vpop.f32.mrb[9].mxu0  ;;  %v866_v29 = vmax.f32 (!%p1767_p3), %v850_v13, 1e-24  ;;  %v853_v40 = vld [vmem:[#allocation3 + $0x48] sm:$0xff] (!%p1767_p3)  ;;  %v1271_v13 = vld [vmem:[%s3023_s3 + $0x58] sm:$0xff] (!%p1767_p3) }
 0x189   : > { %v527_v59 = vpop.f32.mrb[10].mxu0  ;;  %v869_v58 = vmax.f32 (!%p1767_p3), %v853_v40, 1e-24 }
 0x18a   : > { %591 = vst [vmem:[#allocation2 + $0x20] sm:$0xff] %v575_v57  ;;  %v576_v60 = vadd.f32 %v527_v59, %v431_v42  ;;  %v529_v61 = vpop.f32.mrb[11].mxu0  ;;  %v852_v42 = vld [vmem:[#allocation3 + $0x40] sm:$0xff] (!%p1767_p3)  ;;  %v2462_v57 = vstv (!%p1767_p3), %s842_s26  ;;  %1933 = vrsqrt.f32 (!%p1767_p3), %v866_v29 }
 0x18b   : > { %v868_v59 = vmax.f32 (!%p1767_p3), %v852_v42, 1e-24  ;;  %v1920_v61 = vpop.eup (!%p1767_p3), %1919  ;;  %1935 = vrsqrt.f32 (!%p1767_p3), %v869_v58  ;;  %v909_v29 = vld [vmem:[#allocation4] sm:$0x1] (!%p1767_p3)  ;;  %v1024_v42 = vlaneseq (!%p1767_p3) }
 0x18c   : > { %592 = vst [vmem:[#allocation2 + $0x28] sm:$0xff] %v576_v60  ;;  %v855_v60 = vld [vmem:[#allocation3 + $0x58] sm:$0xff] (!%p1767_p3)  ;;  %v910_v40 = vmax.f32 (!%p1767_p3), %v909_v29, 1e-24 }
 0x18d   : > { %1937 = vrsqrt.f32 (!%p1767_p3), %v868_v59 }
 0x18f   : > { %v532_v63 = vpop.f32.mrb[12].mxu0 }
 0x190   : > { %v577_v1 = vadd.f32 %v532_v63, %v432_v62  ;;  %v534_v2 = vpop.f32.mrb[13].mxu0  ;;  %v854_v62 = vld [vmem:[#allocation3 + $0x50] sm:$0xff] (!%p1767_p3)  ;;  %v1922_v63 = vpop.eup (!%p1767_p3), %1921 }
 0x191   : > { %v535_v3 = vpop.f32.mrb[14].mxu0  ;;  %v893_v2 = vmul.f32 (!%p1767_p3), %v1922_v63, %v2462_v57 }
 0x192   : > { %593 = vst [vmem:[#allocation2 + $0x30] sm:$0xff] %v577_v1  ;;  %v578_v4 = vadd.f32 %v535_v3, %v433_v0  ;;  %v537_v5 = vpop.f32.mrb[15].mxu0  ;;  %v895_v0 = vmul.f32 (!%p1767_p3), %v1920_v61, %v2462_v57  ;;  %v1924_v1 = vpop.eup (!%p1767_p3), %1923  ;;  %v871_v3 = vmax.f32 (!%p1767_p3), %v855_v60, 1e-24  ;;  %v914_v60 = vld [vmem:[#allocation2 + $0x10] sm:$0xff] (!%p1767_p3)  ;;  %v912_v61 = vld [vmem:[#allocation2] sm:$0xff] (!%p1767_p3) }
 0x193   : > { %v896_v5 = vmul.f32 (!%p1767_p3), %v1924_v1, %v2462_v57  ;;  %930 = vperm.xlu0 (!%p1767_p3), %1917, %v893_v2   ;;  %v2527_v1 = vstv (!%p1767_p3), %s843_s15 }
 0x194   : > { %594 = vst [vmem:[#allocation2 + $0x38] sm:$0xff] %v578_v4  ;;  %v1926_v4 = vpop.eup (!%p1767_p3), %1925  ;;  %940 = vperm.xlu1 (!%p1767_p3), %1918, %v895_v0   ;;  %1939 = vrsqrt.f32 (!%p1767_p3), %v871_v3 }
 0x197   : > { %v540_v7 = vpop.f32.mrb[16].mxu0 }
 0x198   : > { %v579_v9 = vadd.f32 %v540_v7, %v434_v6  ;;  %v542_v10 = vpop.f32.mrb[17].mxu0  ;;  %v870_v6 = vmax.f32 (!%p1767_p3), %v854_v62, 1e-24  ;;  %v857_v7 = vld [vmem:[#allocation3 + $0x68] sm:$0xff] (!%p1767_p3)  ;;  %945 = vperm.xlu1 (!%p1767_p3), %1918, %v896_v5   ;;  %v1045_v62 = vand.u32 (!%p1767_p3), 127, %v1024_v42  ;;  %v915_v5 = vld [vmem:[#allocation2 + $0x18] sm:$0xff] (!%p1767_p3) }
 0x199   : > { %v543_v14 = vpop.f32.mrb[18].mxu0  ;;  %v856_v10 = vld [vmem:[#allocation3 + $0x60] sm:$0xff] (!%p1767_p3) }
 0x19a   : > { %595 = vst [vmem:[#allocation2 + $0x40] sm:$0xff] %v579_v9  ;;  %v580_v15 = vadd.f32 %v543_v14, %v435_v8  ;;  %v545_v16 = vpop.f32.mrb[19].mxu0  ;;  %v1928_v8 = vpop.eup (!%p1767_p3), %1927  ;;  %v894_v9 = vmul.f32 (!%p1767_p3), %v1926_v4, %v2462_v57  ;;  %1941 = vrsqrt.f32 (!%p1767_p3), %v870_v6  ;;  %v913_v6 = vld [vmem:[#allocation2 + $0x8] sm:$0xff] (!%p1767_p3)  ;;  %vm2530_vm2 = vcmp.lt.s32.totalorder (!%p1767_p3), %v1045_v62, %v2527_v1 }
 0x19b   : > { %v1930_v14 = vpop.eup (!%p1767_p3), %1929  ;;  %v898_v16 = vmul.f32 (!%p1767_p3), %v1928_v8, %v2462_v57 }
 0x19c   : > { %596 = vst [vmem:[#allocation2 + $0x48] sm:$0xff] %v580_v15  ;;  %v873_v15 = vmax.f32 (!%p1767_p3), %v857_v7, 1e-24  ;;  %935 = vperm.xlu0 (!%p1767_p3), %1917, %v894_v9  }
 0x19d   : > { %955 = vperm.xlu1 (!%p1767_p3), %1918, %v898_v16  }
 0x19e   : > { %1943 = vrsqrt.f32 (!%p1767_p3), %v873_v15 }
 0x19f   : > { %v548_v18 = vpop.f32.mrb[20].mxu0 }
 0x1a0   : > { %v581_v20 = vadd.f32 %v548_v18, %v436_v17  ;;  %v550_v21 = vpop.f32.mrb[21].mxu0  ;;  %v872_v17 = vmax.f32 (!%p1767_p3), %v856_v10, 1e-24  ;;  %v859_v18 = vld [vmem:[#allocation3 + $0x78] sm:$0xff] (!%p1767_p3) }
 0x1a1   : > { %v551_v22 = vpop.f32.mrb[22].mxu0  ;;  %v858_v21 = vld [vmem:[#allocation3 + $0x70] sm:$0xff] (!%p1767_p3) }
 0x1a2   : > { %597 = vst [vmem:[#allocation2 + $0x50] sm:$0xff] %v581_v20  ;;  %v582_v23 = vadd.f32 %v551_v22, %v437_v19  ;;  %v553_v24 = vpop.f32.mrb[23].mxu0  ;;  %v1932_v19 = vpop.eup (!%p1767_p3), %1931  ;;  %v897_v20 = vmul.f32 (!%p1767_p3), %v1930_v14, %v2462_v57  ;;  %1945 = vrsqrt.f32 (!%p1767_p3), %v872_v17 }
 0x1a3   : > { %v1934_v22 = vpop.eup (!%p1767_p3), %1933  ;;  %v900_v24 = vmul.f32 (!%p1767_p3), %v1932_v19, %v2462_v57  ;;  %v916_v19 = vld [vmem:[#allocation2 + $0x20] sm:$0xff] (!%p1767_p3) }
 0x1a4   : > { %598 = vst [vmem:[#allocation2 + $0x58] sm:$0xff] %v582_v23  ;;  %v875_v23 = vmax.f32 (!%p1767_p3), %v859_v18, 1e-24  ;;  %950 = vperm.xlu0 (!%p1767_p3), %1917, %v897_v20   ;;  %v917_v18 = vld [vmem:[#allocation2 + $0x28] sm:$0xff] (!%p1767_p3) }
 0x1a5   : > { %965 = vperm.xlu1 (!%p1767_p3), %1918, %v900_v24  }
 0x1a6   : > { %1947 = vrsqrt.f32 (!%p1767_p3), %v875_v23 }
 0x1a7   : > { %v556_v26 = vpop.f32.mrb[24].mxu0 }
 0x1a8   : > { %v583_v30 = vadd.f32 %v556_v26, %v438_v25  ;;  %v558_v31 = vpop.f32.mrb[25].mxu0  ;;  %v874_v25 = vmax.f32 (!%p1767_p3), %v858_v21, 1e-24  ;;  %v1936_v26 = vpop.eup (!%p1767_p3), %1935 }
 0x1a9   : > { %v559_v32 = vpop.f32.mrb[26].mxu0  ;;  %v902_v31 = vmul.f32 (!%p1767_p3), %v1936_v26, %v2462_v57 }
 0x1aa   : > { %599 = vst [vmem:[#allocation2 + $0x60] sm:$0xff] %v583_v30  ;;  %v584_v33 = vadd.f32 %v559_v32, %v439_v27  ;;  %v561_v34 = vpop.f32.mrb[27].mxu0  ;;  %v899_v27 = vmul.f32 (!%p1767_p3), %v1934_v22, %v2462_v57  ;;  %v1938_v30 = vpop.eup (!%p1767_p3), %1937  ;;  %1949 = vrsqrt.f32 (!%p1767_p3), %v874_v25 }
 0x1ab   : > { %v1940_v32 = vpop.eup (!%p1767_p3), %1939  ;;  %975 = vperm.xlu1 (!%p1767_p3), %1918, %v902_v31   ;;  %1951 = vrsqrt.f32 (!%p1767_p3), %v910_v40  ;;  %v918_v31 = vld [vmem:[#allocation2 + $0x30] sm:$0xff] (!%p1767_p3) }
 0x1ac   : > { %600 = vst [vmem:[#allocation2 + $0x68] sm:$0xff] %v584_v33  ;;  %960 = vperm.xlu0 (!%p1767_p3), %1917, %v899_v27   ;;  %v901_v33 = vmul.f32 (!%p1767_p3), %v1938_v30, %v2462_v57  ;;  %v1942_v34 = vpop.eup (!%p1767_p3), %1941  ;;  %v919_v30 = vld [vmem:[#allocation2 + $0x38] sm:$0xff] (!%p1767_p3) }
 0x1ae   : > { %840 = sbr.rel (%p1767_p3) target bundleno = 1118 (0x45e), region = 56 }
 0x1af   : > { %v564_v36 = vpop.f32.mrb[28].mxu0 }
 0x1b0   : > { %v585_v38 = vadd.f32 %v564_v36, %v440_v35  ;;  %v566_v39 = vpop.f32.mrb[29].mxu0  ;;  %v904_v35 = vmul.f32 (!%p1767_p3), %v1940_v32, %v2462_v57  ;;  %v1944_v36 = vpop.eup (!%p1767_p3), %1943  ;;  %970 = vperm.xlu0 (!%p1767_p3), %1917, %v901_v33  }
 0x1b1   : > { %v567_v41 = vpop.f32.mrb[30].mxu0  ;;  %v906_v39 = vmul.f32 (!%p1767_p3), %v1944_v36, %v2462_v57 }
 0x1b2   : > { %601 = vst [vmem:[#allocation2 + $0x70] sm:$0xff] %v585_v38  ;;  %v586_v43 = vadd.f32 %v567_v41, %v441_v37  ;;  %v569_v44 = vpop.f32.mrb[31].mxu0  ;;  %v903_v37 = vmul.f32 (!%p1767_p3), %v1942_v34, %v2462_v57  ;;  %v1946_v38 = vpop.eup (!%p1767_p3), %1945  ;;  %985 = vperm.xlu1 (!%p1767_p3), %1918, %v904_v35  }
 0x1b3   : > { %v1948_v41 = vpop.eup (!%p1767_p3), %1947  ;;  %v925_v40 = vld [vmem:[#allocation2 + $0x68] sm:$0xff] (!%p1767_p3) }
 0x1b4   : > { %602 = vst [vmem:[#allocation2 + $0x78] sm:$0xff] %v586_v43  ;;  %980 = vperm.xlu0 (!%p1767_p3), %1917, %v903_v37   ;;  %v905_v43 = vmul.f32 (!%p1767_p3), %v1946_v38, %v2462_v57  ;;  %v1950_v44 = vpop.eup (!%p1767_p3), %1949  ;;  %v908_v45 = vmul.f32 (!%p1767_p3), %v1948_v41, %v2462_v57  ;;  %v921_v41 = vld [vmem:[#allocation2 + $0x48] sm:$0xff] (!%p1767_p3) }
 0x1b5   : > { %v907_v46 = vmul.f32 %v1950_v44, %v2462_v57  ;;  %v2522_v57 = vshrl.u32 %v1024_v42, 7  ;;  %v1952_v59 = vpop.eup %1951  ;;  %v924_v42 = vld [vmem:[#allocation2 + $0x60] sm:$0xff] }
 0x1b6   : > { %995 = vperm.xlu1 %1918, %v906_v39  }
 0x1b7   : > { %v1026_v58 = vsub.s32 0, %v2522_v57  ;;  %v1212_v62 = vadd.s32 8, %v2522_v57  ;;  %vm1244_vm3 = vcmp.lt.s32.totalorder %v2522_v57, %v2527_v1 }
 0x1b8   : > { %990 = vperm.xlu0 %1917, %v905_v43   ;;  %v920_v43 = vld [vmem:[#allocation2 + $0x40] sm:$0xff]  ;;  %vm1377_vm6 = vmand %vm1244_vm3, %vm2530_vm2 }
 0x1b9   : > { %v2525_v63 = vrot.slane %v1952_v59, %v1026_v58  ;;  %vm1245_vm4 = vcmp.lt.s32.totalorder %v1212_v62, %v2527_v1 }
 0x1ba   : > { %1005 = vperm.xlu1 %1918, %v908_v45   ;;  %vm1378_vm7 = vmand %vm1245_vm4, %vm2530_vm2 }
 0x1bc   : > { %1000 = vperm.xlu0 %1917, %v907_v46  }
 0x1be   : > { %1278 = vperm.xlu1 %1918, %v1260_v47  }
 0x1c0   : > { %1281 = vperm.xlu0 %1917, %v1261_v48  }
 0x1c2   : > { %1284 = vperm.xlu1 %1918, %v1262_v49  }
 0x1c4   : > { %1290 = vperm.xlu0 %1917, %v1264_v50  }
 0x1c6   : > { %1287 = vperm.xlu1 %1918, %v1263_v51  }
 0x1c8   : > { %1296 = vperm.xlu0 %1917, %v1266_v52   ;;  %v923_v52 = vld [vmem:[#allocation2 + $0x58] sm:$0xff] }
 0x1ca   : > { %1293 = vperm.xlu1 %1918, %v1265_v53   ;;  %v922_v53 = vld [vmem:[#allocation2 + $0x50] sm:$0xff] }
 0x1cc   : > { %1302 = vperm.xlu0 %1917, %v1268_v54  }
 0x1ce   : > { %1299 = vperm.xlu1 %1918, %v1267_v55  }
 0x1d0   : > { %1308 = vperm.xlu0 %1917, %v1270_v56  }
 0x1d2   : > { %1305 = vperm.xlu1 %1918, %v1269_v11  }
 0x1d4   : > { %1314 = vperm.xlu0 %1917, %v1272_v12  }
 0x1d6   : > { %1311 = vperm.xlu1 %1918, %v1271_v13  }
 0x1da   : > { %1317 = vperm.xlu1 %1918, %v1273_v28  }
 0x212   : > { %v931_v3 = vpop.permute.xlu0 %930 }
 0x213   : > { %v941_v0 = vpop.permute.xlu1 %940  ;;  %v1008_v4 = vmul.f32 %v931_v3, %v912_v61 }
 0x214   : > { %v1010_v2 = vmul.f32 %v941_v0, %v914_v60  ;;  %v1213_v0 = vadd.s32 16, %v2522_v57 }
 0x215   : > { %v1028_v9 = vmul.f32 %v2525_v63, %v1008_v4 }
 0x216   : > { %v1030_v8 = vmul.f32 %v2525_v63, %v1010_v2  ;;  %vm1246_vm5 = vcmp.lt.s32.totalorder %v1213_v0, %v2527_v1 }
 0x217   : > { %v946_v10 = vpop.permute.xlu1 %945  ;;  %v2538_v17 = vsel %vm2530_vm2, %v1028_v9, -1e+30  ;;  %vm2635_vm9 = vmand %vm1246_vm5, %vm2530_vm2 }
 0x218   : > { %v1011_v15 = vmul.f32 %v946_v10, %v915_v5  ;;  %1066 = vmax.xlane.f32.xlu0 %v2538_v17  ;;  %v2544_v22 = vsel %vm2530_vm2, %v1030_v8, -1e+30  ;;  %v926_v8 = vld [vmem:[#allocation2 + $0x70] sm:$0xff] }
 0x21a   : > { %v1031_v25 = vmul.f32 %v2525_v63, %v1011_v15 }
 0x21b   : > { %v936_v14 = vpop.permute.xlu0 %935 }
 0x21c   : > { %v1009_v16 = vmul.f32 %v936_v14, %v913_v6  ;;  %v956_v21 = vpop.permute.xlu1 %955  ;;  %1070 = vmax.xlane.f32.xlu0 %v2544_v22  ;;  %v2557_v38 = vsel %vm2530_vm2, %v1031_v25, -1e+30  ;;  %v927_v6 = vld [vmem:[#allocation2 + $0x78] sm:$0xff]  ;;  %v1214_v25 = vadd.s32 24, %v2522_v57 }
 0x21d   : > { %v1013_v23 = vmul.f32 %v956_v21, %v917_v18  ;;  %v2620_v21 = vld [vmem:[%s3024_s4] ss:$0 sm:$0xff] }
 0x21e   : > { %v1029_v20 = vmul.f32 %v2525_v63, %v1009_v16  ;;  %vm1247_vm13 = vcmp.lt.s32.totalorder %v1214_v25, %v2527_v1 }
 0x21f   : > { %v1033_v34 = vmul.f32 %v2525_v63, %v1013_v23  ;;  %vm1380_vm0 = vmand %vm1247_vm13, %vm2530_vm2 }
 0x220   : > { %v2549_v27 = vsel %vm2530_vm2, %v1029_v20, -1e+30  ;;  %1072 = vmax.xlane.f32.xlu0 %v2557_v38 }
 0x221   : > { %1068 = vmax.xlane.f32.xlu1 %v2549_v27  ;;  %v2568_v47 = vsel %vm2530_vm2, %v1033_v34, -1e+30  ;;  %v2186_v34 = vmov 0.0  }
 0x223   : > { %v951_v24 = vpop.permute.xlu0 %950 }
 0x224   : > { %v1012_v26 = vmul.f32 %v951_v24, %v916_v19  ;;  %v966_v33 = vpop.permute.xlu1 %965  ;;  %1076 = vmax.xlane.f32.xlu0 %v2568_v47 }
 0x225   : > { %v1015_v36 = vmul.f32 %v966_v33, %v919_v30 }
 0x226   : > { %v1032_v32 = vmul.f32 %v2525_v63, %v1012_v26 }
 0x227   : > { %v1035_v48 = vmul.f32 %v2525_v63, %v1015_v36 }
 0x228   : > { %v2561_v39 = vsel %vm2530_vm2, %v1032_v32, -1e+30 }
 0x229   : > { %1074 = vmax.xlane.f32.xlu1 %v2561_v39  ;;  %v2581_v28 = vsel %vm2530_vm2, %v1035_v48, -1e+30 }
 0x22a   : > { %v976_v45 = vpop.permute.xlu1 %975  ;;  %1080 = vmax.xlane.f32.xlu0 %v2581_v28 }
 0x22b   : > { %v961_v35 = vpop.permute.xlu0 %960  ;;  %v1017_v49 = vmul.f32 %v976_v45, %v921_v41 }
 0x22c   : > { %v1014_v37 = vmul.f32 %v961_v35, %v918_v31 }
 0x22d   : > { %v1037_v12 = vmul.f32 %v2525_v63, %v1017_v49 }
 0x22e   : > { %v1034_v44 = vmul.f32 %v2525_v63, %v1014_v37 }
 0x22f   : > { %v971_v46 = vpop.permute.xlu0 %970  ;;  %v2595_v4 = vsel %vm2530_vm2, %v1037_v12, -1e+30 }
 0x230   : > { %v1016_v50 = vmul.f32 %v971_v46, %v920_v43  ;;  %v2573_v51 = vsel %vm2530_vm2, %v1034_v44, -1e+30  ;;  %1084 = vmax.xlane.f32.xlu0 %v2595_v4 }
 0x231   : > { %1078 = vmax.xlane.f32.xlu1 %v2573_v51  ;;  %v986_v55 = vpop.permute.xlu1 %985 }
 0x232   : > { %v1036_v54 = vmul.f32 %v2525_v63, %v1016_v50  ;;  %v1019_v56 = vmul.f32 %v986_v55, %v923_v52  ;;  %v1274_v55 = vld [vmem:[%s3023_s3 + $0x70] sm:$0xff] }
 0x233   : > { %v981_v11 = vpop.permute.xlu0 %980 }
 0x234   : > { %v1018_v13 = vmul.f32 %v981_v11, %v922_v53  ;;  %v2585_v29 = vsel %vm2530_vm2, %v1036_v54, -1e+30  ;;  %v1039_v60 = vmul.f32 %v2525_v63, %v1019_v56  ;;  %v1275_v54 = vld [vmem:[%s3023_s3 + $0x78] sm:$0xff] }
 0x235   : > { %1082 = vmax.xlane.f32.xlu1 %v2585_v29  ;;  %v996_v59 = vpop.permute.xlu1 %995 }
 0x236   : > { %v1038_v58 = vmul.f32 %v2525_v63, %v1018_v13  ;;  %v1021_v2 = vmul.f32 %v996_v59, %v925_v40  ;;  %v2608_v15 = vsel %vm2530_vm2, %v1039_v60, -1e+30 }
 0x237   : > { %v991_v61 = vpop.permute.xlu0 %990  ;;  %1088 = vmax.xlane.f32.xlu0 %v2608_v15 }
 0x238   : > { %v1020_v3 = vmul.f32 %v991_v61, %v924_v42  ;;  %v2599_v5 = vsel %vm2530_vm2, %v1038_v58, -1e+30  ;;  %v1041_v16 = vmul.f32 %v2525_v63, %v1021_v2 }
 0x239   : > { %1086 = vmax.xlane.f32.xlu1 %v2599_v5  ;;  %v1006_v10 = vpop.permute.xlu1 %1005 }
 0x23a   : > { %v1040_v9 = vmul.f32 %v2525_v63, %v1020_v3  ;;  %v1023_v18 = vmul.f32 %v1006_v10, %v927_v6  ;;  %v2643_v32 = vsel %vm2530_vm2, %v1041_v16, -1e+30  ;;  %v1215_v10 = vadd.s32 32, %v2522_v57 }
 0x23b   : > { %v1001_v14 = vpop.permute.xlu0 %1000  ;;  %1092 = vmax.xlane.f32.xlu0 %v2643_v32 }
 0x23c   : > { %v1022_v19 = vmul.f32 %v1001_v14, %v926_v8  ;;  %v2615_v20 = vsel %vm2530_vm2, %v1040_v9, -1e+30  ;;  %v1043_v31 = vmul.f32 %v2525_v63, %v1023_v18  ;;  %vm1248_vm5 = vcmp.lt.s32.totalorder %v1215_v10, %v2527_v1 }
 0x23d   : > { %1090 = vmax.xlane.f32.xlu1 %v2615_v20  ;;  %v1279_v24 = vpop.permute.xlu1 %1278 }
 0x23e   : > { %v1042_v23 = vmul.f32 %v2525_v63, %v1022_v19  ;;  %vm1329_vm8 = vcmp.eq.s32.totalorder %v1279_v24, %v2620_v21  ;;  %v2659_v43 = vsel %vm2530_vm2, %v1043_v31, -1e+30 }
 0x23f   : > { %v1282_v26 = vpop.permute.xlu0 %1281  ;;  %vm1393_vm11 = vmand %vm1329_vm8, %vm1377_vm6  ;;  %1096 = vmax.xlane.f32.xlu0 %v2659_v43 }
 0x240   : > { %vm1330_vm10 = vcmp.eq.s32.totalorder %v1282_v26, %v2620_v21  ;;  %v2647_v33 = vsel %vm2530_vm2, %v1042_v23, -1e+30  ;;  %v1769_v35 = vsel %vm1393_vm11, 1.0, %v2186_v34  ;;  %vm1381_vm8 = vmand %vm1248_vm5, %vm2530_vm2 }
 0x241   : > { %1094 = vmax.xlane.f32.xlu1 %v2647_v33  ;;  %vm1394_vm12 = vmand %vm1330_vm10, %vm1378_vm7  ;;  %v1285_v63 = vpop.permute.xlu1 %1284  ;;  %v1473_v37 = vmul.f32 %v1769_v35, %v2538_v17 }
 0x242   : > { %v1770_v36 = vsel %vm1394_vm12, 1.0, %v2186_v34  ;;  %vm1331_vm14 = vcmp.eq.s32.totalorder %v1285_v63, %v2620_v21 }
 0x243   : > { %v1474_v41 = vmul.f32 %v1770_v36, %v2549_v27  ;;  %vm1395_vm15 = vmand %vm1331_vm14, %vm2635_vm9  ;;  %v1291_v56 = vpop.permute.xlu0 %1290 }
 0x244   : > { %v1771_v45 = vsel %vm1395_vm15, 1.0, %v2186_v34  ;;  %vm1333_vm7 = vcmp.eq.s32.totalorder %v1291_v56, %v2620_v21 }
 0x245   : > { %v1489_v44 = vadd.f32 %v1474_v41, %v1473_v37  ;;  %v1288_v46 = vpop.permute.xlu1 %1287  ;;  %v1475_v48 = vmul.f32 %v1771_v45, %v2544_v22  ;;  %vm1397_vm11 = vmand %vm1333_vm7, %vm1381_vm8  ;;  %v1218_v41 = vadd.s32 56, %v2522_v57 }
 0x246   : > { %vm1332_vm3 = vcmp.eq.s32.totalorder %v1288_v46, %v2620_v21 }
 0x247   : > { %v1490_v49 = vadd.f32 %v1489_v44, %v1475_v48  ;;  %vm1396_vm4 = vmand %vm1332_vm3, %vm1380_vm0  ;;  %v2679_v12 = vpop.permute.xlu0 %1296  ;;  %vm1251_vm15 = vcmp.lt.s32.totalorder %v1218_v41, %v2527_v1 }
 0x248   : > { %v1772_v50 = vsel %vm1396_vm4, 1.0, %v2186_v34  ;;  %vm1335_vm14 = vcmp.eq.s32.totalorder %v2679_v12, %v2620_v21  ;;  %vm1384_vm4 = vmand %vm1251_vm15, %vm2530_vm2 }
 0x249   : > { %v1476_v52 = vmul.f32 %v1772_v50, %v2557_v38  ;;  %v1294_v11 = vpop.permute.xlu1 %1293 }
 0x24a   : > { %vm1334_vm9 = vcmp.eq.s32.totalorder %v1294_v11, %v2620_v21 }
 0x24b   : > { %v2671_v53 = vadd.f32 %v1490_v49, %v1476_v52  ;;  %v2683_v40 = vpop.permute.xlu0 %1302 }
 0x24d   : > { %v2681_v13 = vpop.permute.xlu1 %1299 }
 0x24e   : > { %vm1336_vm3 = vcmp.eq.s32.totalorder %v2681_v13, %v2620_v21 }
 0x24f   : > { %v2687_v58 = vpop.permute.xlu0 %1308 }
 0x251   : > { %v2685_v42 = vpop.permute.xlu1 %1305 }
 0x252   : > { %1323 = vperm.xlu1 %1918, %v1275_v54  }
 0x253   : > { %v2691_v60 = vpop.permute.xlu0 %1314 }
 0x255   : > { %1320 = vperm.xlu0 %1917, %v1274_v55   ;;  %v2689_v59 = vpop.permute.xlu1 %1311 }
 0x259   : > { %v2693_v61 = vpop.permute.xlu1 %1317 }
 0x274   : > { %1441 = vadd.xlane.f32.xlu0 %v1769_v35 }
 0x276   : > { %1443 = vadd.xlane.f32.xlu1 %v1770_v36 }
 0x27a   : > { %1445 = vadd.xlane.f32.xlu1 %v1771_v45 }
 0x27e   : > { %1447 = vadd.xlane.f32.xlu1 %v1772_v50  ;;  %v1773_v50 = vsel %vm1397_vm11, 1.0, %v2186_v34  ;;  %vm1338_vm11 = vcmp.eq.s32.totalorder %v2685_v42, %v2620_v21 }
 0x2a5   : > { %v2695_v62 = vpop.xlane.xlu0 %1066 }
 0x2a6   : > { %v1098_v0 = vsub.f32 %v2538_v17, %v2695_v62  ;;  %v1216_v17 = vadd.s32 40, %v2522_v57 }
 0x2a8   : > { %v1114_v2 = vmul.f32 1.442695, %v1098_v0  ;;  %vm1249_vm6 = vcmp.lt.s32.totalorder %v1216_v17, %v2527_v1 }
 0x2a9   : > { %v2701_v6 = vpop.xlane.xlu0 %1070  ;;  %vm1382_vm10 = vmand %vm1249_vm6, %vm2530_vm2 }
 0x2aa   : > { %1953 = vpow2.f32 %v1114_v2  ;;  %v1100_v9 = vsub.f32 %v2544_v22, %v2701_v6  ;;  %vm1398_vm12 = vmand %vm1334_vm9, %vm1382_vm10  ;;  %vm1337_vm9 = vcmp.eq.s32.totalorder %v2683_v40, %v2620_v21 }
 0x2ab   : > { %v2755_v0 = vsel %vm1398_vm12, 1.0, %v2186_v34  ;;  %vm1400_vm6 = vmand %vm1336_vm3, %vm1384_vm4  ;;  %vm1339_vm3 = vcmp.eq.s32.totalorder %v2687_v58, %v2620_v21 }
 0x2ac   : > { %v1118_v16 = vmul.f32 1.442695, %v1100_v9  ;;  %v1219_v9 = vadd.s32 64, %v2522_v57  ;;  %v2793_v13 = vsel %vm1400_vm6, 1.0, %v2186_v34 }
 0x2ad   : > { %v2710_v19 = vpop.xlane.xlu0 %1072 }
 0x2ae   : > { %v2699_v3 = vpop.xlane.xlu1 %1068  ;;  %vm1252_vm7 = vcmp.lt.s32.totalorder %v1219_v9, %v2527_v1 }
 0x2af   : > { %v1099_v8 = vsub.f32 %v2549_v27, %v2699_v3  ;;  %v1101_v27 = vsub.f32 %v2557_v38, %v2710_v19  ;;  %v1217_v38 = vadd.s32 48, %v2522_v57  ;;  %vm1385_vm10 = vmand %vm1252_vm7, %vm2530_vm2 }
 0x2b1   : > { %v1116_v14 = vmul.f32 1.442695, %v1099_v8  ;;  %v1120_v22 = vmul.f32 1.442695, %v1101_v27  ;;  %v2720_v25 = vpop.xlane.xlu0 %1076  ;;  %vm1250_vm13 = vcmp.lt.s32.totalorder %v1217_v38, %v2527_v1  ;;  %v1477_v8 = vmul.f32 %v1773_v50, %v2561_v39 }
 0x2b2   : > { %v1103_v31 = vsub.f32 %v2568_v47, %v2720_v25  ;;  %vm1383_vm0 = vmand %vm1250_vm13, %vm2530_vm2 }
 0x2b3   : > { %1955 = vpow2.f32 %v1116_v14  ;;  %vm1399_vm5 = vmand %vm1335_vm14, %vm1383_vm0 }
 0x2b4   : > { %1957 = vpow2.f32 %v1118_v16  ;;  %v1954_v35 = vpop.eup %1953  ;;  %v1124_v63 = vmul.f32 1.442695, %v1103_v31  ;;  %v1492_v16 = vadd.f32 %v2671_v53, %v1477_v8  ;;  %v2787_v12 = vsel %vm1399_vm5, 1.0, %v2186_v34  ;;  %vm1401_vm13 = vmand %vm1337_vm9, %vm1385_vm10 }
 0x2b5   : > { %1959 = vpow2.f32 %v1120_v22  ;;  %1146 = vadd.xlane.f32.xlu0 %v1954_v35  ;;  %v1221_v31 = vadd.s32 80, %v2522_v57  ;;  %vm1340_vm5 = vcmp.eq.s32.totalorder %v2689_v59, %v2620_v21 }
 0x2b6   : > { %v2708_v18 = vpop.xlane.xlu1 %1074 }
 0x2b7   : > { %v1102_v23 = vsub.f32 %v2561_v39, %v2708_v18  ;;  %v2736_v37 = vpop.xlane.xlu0 %1080  ;;  %v1220_v39 = vadd.s32 72, %v2522_v57  ;;  %vm1254_vm14 = vcmp.lt.s32.totalorder %v1221_v31, %v2527_v1 }
 0x2b8   : > { %v1105_v46 = vsub.f32 %v2581_v28, %v2736_v37  ;;  %vm1387_vm4 = vmand %vm1254_vm14, %vm2530_vm2 }
 0x2b9   : > { %v1122_v26 = vmul.f32 1.442695, %v1102_v23  ;;  %v1478_v23 = vmul.f32 %v2755_v0, %v2568_v47  ;;  %vm1253_vm8 = vcmp.lt.s32.totalorder %v1220_v39, %v2527_v1  ;;  %vm1403_vm7 = vmand %vm1339_vm3, %vm1387_vm4 }
 0x2ba   : > { %v1128_v49 = vmul.f32 1.442695, %v1105_v46  ;;  %vm1386_vm12 = vmand %vm1253_vm8, %vm2530_vm2  ;;  %v1779_v58 = vsel %vm1403_vm7, 1.0, %v2186_v34 }
 0x2bb   : > { %1961 = vpow2.f32 %v1122_v26  ;;  %vm1402_vm15 = vmand %vm1338_vm11, %vm1386_vm12  ;;  %vm1341_vm11 = vcmp.eq.s32.totalorder %v2691_v60, %v2620_v21  ;;  %v1483_v31 = vmul.f32 %v1779_v58, %v2599_v5 }
 0x2bc   : > { %1963 = vpow2.f32 %v1124_v63  ;;  %v1479_v63 = vmul.f32 %v2787_v12, %v2573_v51 }
 0x2bd   : > { %v1956_v48 = vpop.eup %1955  ;;  %v2749_v55 = vpop.xlane.xlu0 %1084 }
 0x2be   : > { %v2718_v24 = vpop.xlane.xlu1 %1078  ;;  %v1958_v52 = vpop.eup %1957  ;;  %1148 = vadd.xlane.f32.xlu1 %v1956_v48  ;;  %v1107_v11 = vsub.f32 %v2595_v4, %v2749_v55  ;;  %v1480_v48 = vmul.f32 %v2793_v13, %v2581_v28  ;;  %v1777_v28 = vsel %vm1401_vm13, 1.0, %v2186_v34 }
 0x2bf   : > { %v1104_v30 = vsub.f32 %v2573_v51, %v2718_v24  ;;  %1150 = vadd.xlane.f32.xlu0 %v1958_v52  ;;  %v1960_v14 = vpop.eup %1959  ;;  %v1222_v51 = vadd.s32 88, %v2522_v57 }
 0x2c0   : > { %v1132_v10 = vmul.f32 1.442695, %v1107_v11  ;;  %v1223_v11 = vadd.s32 96, %v2522_v57 }
 0x2c1   : > { %v1126_v44 = vmul.f32 1.442695, %v1104_v30  ;;  %v1493_v30 = vadd.f32 %v1492_v16, %v1478_v23  ;;  %vm1255_vm0 = vcmp.lt.s32.totalorder %v1222_v51, %v2527_v1  ;;  %v1224_v23 = vadd.s32 104, %v2522_v57 }
 0x2c2   : > { %v2734_v36 = vpop.xlane.xlu1 %1082  ;;  %1449 = vadd.xlane.f32.xlu1 %v1773_v50  ;;  %vm1388_vm6 = vmand %vm1255_vm0, %vm2530_vm2  ;;  %vm1256_vm8 = vcmp.lt.s32.totalorder %v1223_v11, %v2527_v1 }
 0x2c3   : > { %v1106_v45 = vsub.f32 %v2585_v29, %v2734_v36  ;;  %1965 = vpow2.f32 %v1126_v44  ;;  %1152 = vadd.xlane.f32.xlu0 %v1960_v14  ;;  %v1494_v46 = vadd.f32 %v1493_v30, %v1479_v63  ;;  %vm1404_vm9 = vmand %vm1340_vm5, %vm1388_vm6  ;;  %vm1257_vm10 = vcmp.lt.s32.totalorder %v1224_v23, %v2527_v1 }
 0x2c4   : > { %1967 = vpow2.f32 %v1128_v49  ;;  %v2770_v17 = vpop.xlane.xlu0 %1088  ;;  %vm1389_vm12 = vmand %vm1256_vm8, %vm2530_vm2 }
 0x2c5   : > { %v1130_v56 = vmul.f32 1.442695, %v1106_v45  ;;  %v1109_v22 = vsub.f32 %v2608_v15, %v2770_v17  ;;  %v1962_v47 = vpop.eup %1961  ;;  %v1495_v40 = vadd.f32 %v1494_v46, %v1480_v48  ;;  %vm1390_vm14 = vmand %vm1257_vm10, %vm2530_vm2 }
 0x2c6   : > { %v2747_v54 = vpop.xlane.xlu1 %1086  ;;  %v1964_v26 = vpop.eup %1963  ;;  %1154 = vadd.xlane.f32.xlu1 %v1962_v47  ;;  %v1225_v47 = vadd.s32 112, %v2522_v57  ;;  %vm1405_vm0 = vmand %vm1341_vm11, %vm1389_vm12 }
 0x2c7   : > { %v1108_v2 = vsub.f32 %v2599_v5, %v2747_v54  ;;  %1969 = vpow2.f32 %v1130_v56  ;;  %1156 = vadd.xlane.f32.xlu0 %v1964_v26  ;;  %v1136_v35 = vmul.f32 1.442695, %v1109_v22  ;;  %v1780_v26 = vsel %vm1404_vm9, 1.0, %v2186_v34 }
 0x2c8   : > { %1971 = vpow2.f32 %v1132_v10  ;;  %v2804_v44 = vpop.xlane.xlu0 %1092  ;;  %v1481_v10 = vmul.f32 %v1777_v28, %v2585_v29  ;;  %vm1258_vm13 = vcmp.lt.s32.totalorder %v1225_v47, %v2527_v1  ;;  %v1781_v5 = vsel %vm1405_vm0, 1.0, %v2186_v34 }
 0x2c9   : > { %v1134_v27 = vmul.f32 1.442695, %v1108_v2  ;;  %v1111_v42 = vsub.f32 %v2643_v32, %v2804_v44  ;;  %v2827_v2 = vsel %vm1402_vm15, 1.0, %v2186_v34  ;;  %vm1342_vm15 = vcmp.eq.s32.totalorder %v2693_v61, %v2620_v21  ;;  %vm1391_vm4 = vmand %vm1258_vm13, %vm2530_vm2 }
 0x2ca   : > { %v2784_v53 = vpop.xlane.xlu1 %1090  ;;  %v1496_v39 = vadd.f32 %v1495_v40, %v1481_v10  ;;  %v1482_v29 = vmul.f32 %v2827_v2, %v2595_v4  ;;  %vm1406_vm5 = vmand %vm1342_vm15, %vm1390_vm14  ;;  %v1485_v63 = vmul.f32 %v1781_v5, %v2615_v20 }
 0x2cb   : > { %1973 = vpow2.f32 %v1134_v27  ;;  %v1110_v38 = vsub.f32 %v2615_v20, %v2784_v53  ;;  %v1140_v9 = vmul.f32 1.442695, %v1111_v42 }
 0x2cc   : > { %1975 = vpow2.f32 %v1136_v35  ;;  %v2834_v14 = vpop.xlane.xlu0 %1096  ;;  %v1497_v4 = vadd.f32 %v1496_v39, %v1482_v29 }
 0x2cd   : > { %v1966_v41 = vpop.eup %1965  ;;  %v1138_v49 = vmul.f32 1.442695, %v1110_v38  ;;  %v1113_v22 = vsub.f32 %v2659_v43, %v2834_v14  ;;  %v1484_v38 = vmul.f32 %v1780_v26, %v2608_v15  ;;  %v1782_v15 = vsel %vm1406_vm5, 1.0, %v2186_v34 }
 0x2ce   : > { %v1968_v45 = vpop.eup %1967  ;;  %1158 = vadd.xlane.f32.xlu1 %v1966_v41  ;;  %v2817_v52 = vpop.xlane.xlu1 %1094  ;;  %v1498_v35 = vadd.f32 %v1497_v4, %v1483_v31  ;;  %v1486_v46 = vmul.f32 %v1782_v15, %v2643_v32 }
 0x2cf   : > { %1160 = vadd.xlane.f32.xlu0 %v1968_v45  ;;  %1977 = vpow2.f32 %v1138_v49  ;;  %v1112_v8 = vsub.f32 %v2647_v33, %v2817_v52  ;;  %v1144_v59 = vmul.f32 1.442695, %v1113_v22 }
 0x2d0   : > { %1979 = vpow2.f32 %v1140_v9 }
 0x2d1   : > { %v1970_v50 = vpop.eup %1969  ;;  %v1142_v27 = vmul.f32 1.442695, %v1112_v8 }
 0x2d2   : > { %v1972_v56 = vpop.eup %1971  ;;  %1162 = vadd.xlane.f32.xlu1 %v1970_v50 }
 0x2d3   : > { %1164 = vadd.xlane.f32.xlu0 %v1972_v56  ;;  %1981 = vpow2.f32 %v1142_v27 }
 0x2d4   : > { %v1321_v30 = vpop.permute.xlu0 %1320  ;;  %1983 = vpow2.f32 %v1144_v59 }
 0x2d5   : > { %v1974_v16 = vpop.eup %1973  ;;  %vm1343_vm3 = vcmp.eq.s32.totalorder %v1321_v30, %v2620_v21 }
 0x2d6   : > { %1451 = vadd.xlane.f32.xlu1 %v2755_v0  ;;  %v1976_v0 = vpop.eup %1975  ;;  %vm1407_vm7 = vmand %vm1343_vm3, %vm1391_vm4 }
 0x2d7   : > { %1166 = vadd.xlane.f32.xlu0 %v1974_v16  ;;  %v1783_v41 = vsel %vm1407_vm7, 1.0, %v2186_v34 }
 0x2d8   : > { %v1487_v48 = vmul.f32 %v1783_v41, %v2647_v33 }
 0x2d9   : > { %v1978_v60 = vpop.eup %1977 }
 0x2da   : > { %1453 = vadd.xlane.f32.xlu1 %v2787_v12  ;;  %v1226_v12 = vadd.s32 120, %v2522_v57  ;;  %v1980_v61 = vpop.eup %1979  ;;  %v1324_v57 = vpop.permute.xlu1 %1323 }
 0x2db   : > { %1168 = vadd.xlane.f32.xlu0 %v1976_v0  ;;  %vm1344_vm9 = vcmp.eq.s32.totalorder %v1324_v57, %v2620_v21 }
 0x2dc   : > { %vm1259_vm6 = vcmp.lt.s32.totalorder %v1226_v12, %v2527_v1 }
 0x2dd   : > { %vm1392_vm8 = vmand %vm1259_vm6, %vm2530_vm2  ;;  %v1982_v45 = vpop.eup %1981 }
 0x2de   : > { %1455 = vadd.xlane.f32.xlu1 %v2793_v13  ;;  %v1499_v13 = vadd.f32 %v1498_v35, %v1484_v38  ;;  %vm1408_vm10 = vmand %vm1344_vm9, %vm1392_vm8  ;;  %v1984_v51 = vpop.eup %1983 }
 0x2df   : > { %1170 = vadd.xlane.f32.xlu0 %v1978_v60  ;;  %v1784_v20 = vsel %vm1408_vm10, 1.0, %v2186_v34 }
 0x2e0   : > { %v1500_v1 = vadd.f32 %v1499_v13, %v1485_v63  ;;  %v1488_v21 = vmul.f32 %v1784_v20, %v2659_v43 }
 0x2e2   : > { %1457 = vadd.xlane.f32.xlu1 %v1777_v28  ;;  %v1501_v49 = vadd.f32 %v1500_v1, %v1486_v46 }
 0x2e3   : > { %1172 = vadd.xlane.f32.xlu0 %v1980_v61 }
 0x2e4   : > { %v1502_v7 = vadd.f32 %v1501_v49, %v1487_v48 }
 0x2e6   : > { %1461 = vadd.xlane.f32.xlu1 %v1779_v58  ;;  %v1503_v42 = vadd.f32 %v1502_v7, %v1488_v21 }
 0x2e7   : > { %1174 = vadd.xlane.f32.xlu0 %v1982_v45 }
 0x2ea   : > { %1465 = vadd.xlane.f32.xlu1 %v1781_v5 }
 0x2eb   : > { %1176 = vadd.xlane.f32.xlu0 %v1984_v51 }
 0x2ee   : > { %1469 = vadd.xlane.f32.xlu1 %v1783_v41 }
 0x2ef   : > { %1459 = vadd.xlane.f32.xlu0 %v2827_v2 }
 0x2f2   : > { %1504 = vadd.xlane.f32.xlu1 %v1503_v42 }
 0x2f3   : > { %1463 = vadd.xlane.f32.xlu0 %v1780_v26 }
 0x2f7   : > { %1467 = vadd.xlane.f32.xlu0 %v1782_v15 }
 0x2fb   : > { %1471 = vadd.xlane.f32.xlu0 %v1784_v20 }
 0x301   : > { %v1442_v33 = vpop.xlane.xlu0 %1441 }
 0x302   : > { %v1586_v46 = vsel %vm715_vm1, %v1442_v33, 0.0 }
 0x303   : > { %v1444_v32 = vpop.xlane.xlu1 %1443 }
 0x304   : > { %v1587_v21 = vsel %vm715_vm1, %v1444_v32, 0.0 }
 0x307   : > { %v2885_v50 = vpop.xlane.xlu1 %1445 }
 0x30b   : > { %v2887_v28 = vpop.xlane.xlu1 %1447 }
 0x342   : > { %v1147_v56 = vpop.xlane.xlu0 %1146 }
 0x343   : > { %1985 = vlog2.f32 %v1147_v56  ;;  %v1588_v56 = vadd.f32 %v1587_v21, %v1586_v46 }
 0x34b   : > { %v1149_v34 = vpop.xlane.xlu1 %1148 }
 0x34c   : > { %1987 = vlog2.f32 %v1149_v34  ;;  %v1151_v40 = vpop.xlane.xlu0 %1150 }
 0x34d   : > { %1989 = vlog2.f32 %v1151_v40  ;;  %v1986_v2 = vpop.eup %1985 }
 0x34e   : > { %v1179_v8 = vmul.f32 0.6931472, %v1986_v2 }
 0x34f   : > { %v2889_v43 = vpop.xlane.xlu1 %1449 }
 0x350   : > { %v1153_v11 = vpop.xlane.xlu0 %1152  ;;  %v1513_v39 = vadd.f32 %v1179_v8, %v2695_v62 }
 0x351   : > { %1991 = vlog2.f32 %v1153_v11 }
 0x352   : > { %v1529_v4 = vmul.f32 %v1513_v39, %v1442_v33 }
 0x353   : > { %v1155_v9 = vpop.xlane.xlu1 %1154 }
 0x354   : > { %1993 = vlog2.f32 %v1155_v9  ;;  %v1157_v10 = vpop.xlane.xlu0 %1156  ;;  %v1545_v5 = vsel %vm715_vm1, %v1529_v4, 0.0 }
 0x355   : > { %1995 = vlog2.f32 %v1157_v10  ;;  %v1589_v10 = vsel %vm715_vm1, %v2885_v50, 0.0 }
 0x356   : > { %v1988_v16 = vpop.eup %1987 }
 0x357   : > { %v1990_v23 = vpop.eup %1989  ;;  %v1181_v29 = vmul.f32 0.6931472, %v1988_v16 }
 0x358   : > { %v1183_v22 = vmul.f32 0.6931472, %v1990_v23 }
 0x359   : > { %v1514_v58 = vadd.f32 %v1181_v29, %v2699_v3 }
 0x35a   : > { %v1515_v59 = vadd.f32 %v1183_v22, %v2701_v6 }
 0x35b   : > { %v1159_v27 = vpop.xlane.xlu1 %1158  ;;  %v1992_v0 = vpop.eup %1991  ;;  %v1530_v26 = vmul.f32 %v1514_v58, %v1444_v32  ;;  %v1590_v32 = vadd.f32 %v1589_v10, %v1588_v56 }
 0x35c   : > { %1997 = vlog2.f32 %v1159_v27  ;;  %v1161_v47 = vpop.xlane.xlu0 %1160  ;;  %v1185_v31 = vmul.f32 0.6931472, %v1992_v0  ;;  %v1531_v3 = vmul.f32 %v1515_v59, %v2885_v50 }
 0x35d   : > { %1999 = vlog2.f32 %v1161_v47  ;;  %v1546_v12 = vsel %vm715_vm1, %v1530_v26, 0.0  ;;  %v1593_v47 = vsel %vm715_vm1, %v2889_v43, 0.0 }
 0x35e   : > { %v1994_v38 = vpop.eup %1993  ;;  %v1516_v62 = vadd.f32 %v1185_v31, %v2710_v19  ;;  %v1547_v13 = vadd.f32 %v1546_v12, %v1545_v5  ;;  %v1548_v19 = vsel %vm715_vm1, %v1531_v3, 0.0 }
 0x35f   : > { %v1163_v30 = vpop.xlane.xlu1 %1162  ;;  %v1996_v35 = vpop.eup %1995  ;;  %v1187_v61 = vmul.f32 0.6931472, %v1994_v38 }
 0x360   : > { %v1165_v60 = vpop.xlane.xlu0 %1164  ;;  %2001 = vlog2.f32 %v1163_v30  ;;  %v1532_v6 = vmul.f32 %v1516_v62, %v2887_v28  ;;  %v1189_v41 = vmul.f32 0.6931472, %v1996_v35  ;;  %v1549_v20 = vadd.f32 %v1548_v19, %v1547_v13 }
 0x361   : > { %v1517_v63 = vadd.f32 %v1187_v61, %v2708_v18 }
 0x362   : > { %v1550_v42 = vsel %vm715_vm1, %v1532_v6, 0.0  ;;  %v1518_v18 = vadd.f32 %v1189_v41, %v2720_v25  ;;  %v1591_v25 = vsel %vm715_vm1, %v2887_v28, 0.0 }
 0x363   : > { %v1452_v57 = vpop.xlane.xlu1 %1451  ;;  %v1533_v48 = vmul.f32 %v1517_v63, %v2889_v43  ;;  %v1551_v8 = vadd.f32 %v1550_v42, %v1549_v20  ;;  %v1592_v0 = vadd.f32 %v1591_v25, %v1590_v32 }
 0x364   : > { %v1167_v15 = vpop.xlane.xlu0 %1166  ;;  %v1534_v16 = vmul.f32 %v1518_v18, %v1452_v57  ;;  %v1595_v26 = vsel %vm715_vm1, %v1452_v57, 0.0 }
 0x365   : > { %2003 = vlog2.f32 %v1167_v15  ;;  %v1552_v33 = vsel %vm715_vm1, %v1533_v48, 0.0 }
 0x366   : > { %v1998_v45 = vpop.eup %1997  ;;  %2005 = vlog2.f32 %v1165_v60  ;;  %v1553_v23 = vadd.f32 %v1552_v33, %v1551_v8  ;;  %v1554_v58 = vsel %vm715_vm1, %v1534_v16, 0.0  ;;  %v1594_v60 = vadd.f32 %v1593_v47, %v1592_v0 }
 0x367   : > { %v1191_v1 = vmul.f32 0.6931472, %v1998_v45  ;;  %v1454_v51 = vpop.xlane.xlu1 %1453  ;;  %v2000_v49 = vpop.eup %1999 }
 0x368   : > { %v1169_v7 = vpop.xlane.xlu0 %1168  ;;  %v1193_v34 = vmul.f32 0.6931472, %v2000_v49  ;;  %v1555_v4 = vadd.f32 %v1554_v58, %v1553_v23  ;;  %v1597_v43 = vsel %vm715_vm1, %v1454_v51, 0.0  ;;  %v1596_v62 = vadd.f32 %v1595_v26, %v1594_v60 }
 0x369   : > { %v1519_v40 = vadd.f32 %v1191_v1, %v2718_v24 }
 0x36a   : > { %v2002_v2 = vpop.eup %2001  ;;  %v1520_v27 = vadd.f32 %v1193_v34, %v2736_v37 }
 0x36b   : > { %v1456_v11 = vpop.xlane.xlu1 %1455  ;;  %v1195_v39 = vmul.f32 0.6931472, %v2002_v2  ;;  %v1535_v29 = vmul.f32 %v1519_v40, %v1454_v51 }
 0x36c   : > { %v1171_v9 = vpop.xlane.xlu0 %1170  ;;  %v1536_v28 = vmul.f32 %v1520_v27, %v1456_v11  ;;  %v1599_v57 = vsel %vm715_vm1, %v1456_v11, 0.0 }
 0x36d   : > { %2007 = vlog2.f32 %v1171_v9  ;;  %v1556_v59 = vsel %vm715_vm1, %v1535_v29, 0.0  ;;  %v1521_v30 = vadd.f32 %v1195_v39, %v2734_v36  ;;  %v1598_v36 = vadd.f32 %v1597_v43, %v1596_v62 }
 0x36e   : > { %2009 = vlog2.f32 %v1169_v7  ;;  %v1557_v35 = vadd.f32 %v1556_v59, %v1555_v4  ;;  %v1558_v61 = vsel %vm715_vm1, %v1536_v28, 0.0 }
 0x36f   : > { %v1458_v24 = vpop.xlane.xlu1 %1457  ;;  %v2004_v50 = vpop.eup %2003  ;;  %v1600_v1 = vadd.f32 %v1599_v57, %v1598_v36 }
 0x370   : > { %v1173_v22 = vpop.xlane.xlu0 %1172  ;;  %v2006_v37 = vpop.eup %2005  ;;  %v1199_v38 = vmul.f32 0.6931472, %v2004_v50  ;;  %v1537_v13 = vmul.f32 %v1521_v30, %v1458_v24  ;;  %v1601_v45 = vsel %vm715_vm1, %v1458_v24, 0.0  ;;  %v1559_v19 = vadd.f32 %v1558_v61, %v1557_v35 }
 0x371   : > { %2011 = vlog2.f32 %v1173_v22  ;;  %v1197_v3 = vmul.f32 0.6931472, %v2006_v37  ;;  %v1602_v42 = vadd.f32 %v1601_v45, %v1600_v1 }
 0x372   : > { %v1523_v46 = vadd.f32 %v1199_v38, %v2747_v54  ;;  %v1560_v51 = vsel %vm715_vm1, %v1537_v13, 0.0 }
 0x373   : > { %v1462_v31 = vpop.xlane.xlu1 %1461  ;;  %v1522_v7 = vadd.f32 %v1197_v3, %v2749_v55  ;;  %v1561_v40 = vadd.f32 %v1560_v51, %v1559_v19 }
 0x374   : > { %v1175_v12 = vpop.xlane.xlu0 %1174  ;;  %v1539_v56 = vmul.f32 %v1523_v46, %v1462_v31  ;;  %v1605_v54 = vsel %vm715_vm1, %v1462_v31, 0.0 }
 0x375   : > { %2013 = vlog2.f32 %v1175_v12 }
 0x376   : > { %v1564_v29 = vsel %vm715_vm1, %v1539_v56, 0.0 }
 0x377   : > { %v2008_v5 = vpop.eup %2007  ;;  %v1466_v15 = vpop.xlane.xlu1 %1465 }
 0x378   : > { %v2010_v6 = vpop.eup %2009  ;;  %v1203_v63 = vmul.f32 0.6931472, %v2008_v5  ;;  %v1177_v41 = vpop.xlane.xlu0 %1176  ;;  %v1609_v4 = vsel %vm715_vm1, %v1466_v15, 0.0 }
 0x379   : > { %2015 = vlog2.f32 %v1177_v41  ;;  %v1201_v48 = vmul.f32 0.6931472, %v2010_v6 }
 0x37a   : > { %v1525_v49 = vadd.f32 %v1203_v63, %v2784_v53 }
 0x37b   : > { %v1470_v20 = vpop.xlane.xlu1 %1469  ;;  %v2012_v21 = vpop.eup %2011  ;;  %v1524_v16 = vadd.f32 %v1201_v48, %v2770_v17 }
 0x37c   : > { %v1460_v18 = vpop.xlane.xlu0 %1459  ;;  %v1205_v8 = vmul.f32 0.6931472, %v2012_v21  ;;  %v1541_v9 = vmul.f32 %v1525_v49, %v1466_v15 }
 0x37d   : > { %v1538_v34 = vmul.f32 %v1522_v7, %v1460_v18  ;;  %v1603_v33 = vsel %vm715_vm1, %v1460_v18, 0.0 }
 0x37e   : > { %v1604_v11 = vadd.f32 %v1603_v33, %v1602_v42  ;;  %v1526_v26 = vadd.f32 %v1205_v8, %v2804_v44  ;;  %v1568_v59 = vsel %vm715_vm1, %v1541_v9, 0.0  ;;  %v1613_v44 = vsel %vm715_vm1, %v1470_v20, 0.0 }
 0x37f   : > { %v2014_v2 = vpop.eup %2013  ;;  %v1562_v10 = vsel %vm715_vm1, %v1538_v34, 0.0  ;;  %v1505_v53 = vpop.xlane.xlu1 %1504 }
 0x380   : > { %v1207_v55 = vmul.f32 0.6931472, %v2014_v2  ;;  %v1563_v32 = vadd.f32 %v1562_v10, %v1561_v40  ;;  %v1506_v23 = vrot.slane %v1505_v53, 4  ;;  %v1606_v25 = vadd.f32 %v1605_v54, %v1604_v11  ;;  %v1464_v39 = vpop.xlane.xlu0 %1463 }
 0x381   : > { %v1540_v27 = vmul.f32 %v1524_v16, %v1464_v39  ;;  %v1607_v24 = vsel %vm715_vm1, %v1464_v39, 0.0 }
 0x382   : > { %v1527_v22 = vadd.f32 %v1207_v55, %v2817_v52  ;;  %v1507_v47 = vadd.f32 %v1506_v23, %v1505_v53  ;;  %v1565_v58 = vadd.f32 %v1564_v29, %v1563_v32  ;;  %v1608_v50 = vadd.f32 %v1607_v24, %v1606_v25 }
 0x383   : > { %v2016_v0 = vpop.eup %2015  ;;  %v1566_v17 = vsel %vm715_vm1, %v1540_v27, 0.0 }
 0x384   : > { %v1209_v28 = vmul.f32 0.6931472, %v2016_v0  ;;  %v1508_v30 = vrot.slane %v1507_v47, 2  ;;  %v1567_v31 = vadd.f32 %v1566_v17, %v1565_v58  ;;  %v1468_v37 = vpop.xlane.xlu0 %1467  ;;  %v1543_v60 = vmul.f32 %v1527_v22, %v1470_v20 }
 0x385   : > { %v1610_v12 = vadd.f32 %v1609_v4, %v1608_v50  ;;  %v1542_v38 = vmul.f32 %v1526_v26, %v1468_v37  ;;  %v1611_v52 = vsel %vm715_vm1, %v1468_v37, 0.0 }
 0x386   : > { %v1569_v43 = vadd.f32 %v1568_v59, %v1567_v31  ;;  %v1528_v62 = vadd.f32 %v1209_v28, %v2834_v14  ;;  %v1509_v35 = vadd.f32 %v1508_v30, %v1507_v47  ;;  %v1572_v15 = vsel %vm715_vm1, %v1543_v60, 0.0 }
 0x387   : > { %v1570_v5 = vsel %vm715_vm1, %v1542_v38, 0.0  ;;  %v1612_v3 = vadd.f32 %v1611_v52, %v1610_v12 }
 0x388   : > { %v1571_v61 = vadd.f32 %v1570_v5, %v1569_v43  ;;  %v1472_v57 = vpop.xlane.xlu0 %1471  ;;  %v1510_v13 = vrot.slane %v1509_v35, 1 }
 0x389   : > { %v1544_v6 = vmul.f32 %v1528_v62, %v1472_v57  ;;  %v1615_v36 = vsel %vm715_vm1, %v1472_v57, 0.0  ;;  %v1614_v63 = vadd.f32 %v1613_v44, %v1612_v3 }
 0x38a   : > { %v1511_v41 = vadd.f32 %v1510_v13, %v1509_v35  ;;  %v1573_v45 = vadd.f32 %v1572_v15, %v1571_v61 }
 0x38b   : > { %v1574_v46 = vsel %vm715_vm1, %v1544_v6, 0.0  ;;  %v1616_v14 = vadd.f32 %v1615_v36, %v1614_v63 }
 0x38c   : > { %1824 = vpush %v1511_v41  ;;  %v1575_v19 = vadd.f32 %v1574_v46, %v1573_v45 }
 0x38d   : > { %1617 = vadd.xlane.f32.xlu1 %v1616_v14 }
 0x38e   : > { %1576 = vadd.xlane.f32.xlu0 %v1575_v19 }
 0x3bd   : > { %s1825_s26 = spop %1824 }
 0x41a   : > { %v1618_v1 = vpop.xlane.xlu1 %1617 }
 0x41b   : > { %v1619_v48 = vrot.slane %v1618_v1, 4  ;;  %v1577_v51 = vpop.xlane.xlu0 %1576 }
 0x41c   : > { %v1578_v49 = vrot.slane %v1577_v51, 4 }
 0x41d   : > { %v1620_v20 = vadd.f32 %v1619_v48, %v1618_v1 }
 0x41e   : > { %v1579_v7 = vadd.f32 %v1578_v49, %v1577_v51 }
 0x41f   : > { %v1621_v21 = vrot.slane %v1620_v20, 2 }
 0x420   : > { %v1580_v42 = vrot.slane %v1579_v7, 2 }
 0x421   : > { %v1622_v18 = vadd.f32 %v1621_v21, %v1620_v20 }
 0x422   : > { %v1581_v56 = vadd.f32 %v1580_v42, %v1579_v7 }
 0x423   : > { %v1623_v34 = vrot.slane %v1622_v18, 1 }
 0x424   : > { %v1582_v33 = vrot.slane %v1581_v56, 1 }
 0x425   : > { %v1624_v54 = vadd.f32 %v1623_v34, %v1622_v18 }
 0x426   : > { %v1583_v40 = vadd.f32 %v1582_v33, %v1581_v56 }
 0x428   : > { %1826 = vpush %v1583_v40 }
 0x429   : > { %1828 = vpush %v1624_v54 }
 0x459   : > { %s1827_s7 = spop %1826 }
 0x45a   : > { %s1585_s11 = ssub.f32 %s1825_s26, %s1827_s7  ;;  %s1829_s13 = spop %1828 }
 0x45b   : > { %v1628_v11 = vstv %s1829_s13 }
 0x45c   : > { %v1626_v2 = vstv %s1585_s11  ;;  %1629 = vst [vmem:[#allocation12] sm:$0xff] %v1628_v11 }
 0x45d   : > { %1627 = vst [vmem:[#allocation11] sm:$0xff] %v1626_v2 }
 0x45e PF: > { %p2947_p2 = scmp.eq.s32.totalorder %s1755_s1, 1  ;;  %s2187_s23 = smov [#allocation11]  }
 0x45f   : > { %s1639_s10 = sshll.u32 %s2187_s23, 4  ;;  %s2188_s12 = smov [#allocation12]   ;;  %s1640_s10 = int_to_ptr.vmem [resolvable:$true] %s1639_s10 }
 0x460   : > { %s1652_s22 = sshll.u32 %s2188_s12, 4  ;;  %s2062_s8 = scalar_lea.vmem %s1640_s10, 128  ;;  %s2951_s22 = int_to_ptr.vmem [resolvable:$true] %s1652_s22 }
 0x461   : > { %p2063_p5 = scmp.ne.s32.totalorder %s1640_s10, %s2062_s8  ;;  %p2069_p6 = scmp.lt.s32.totalorder %s1640_s10, %s1640_s10 }
 0x462   : > { %p2070_p8 = scmp.lt.s32.totalorder %s2062_s8, %s2062_s8 }
 0x463   : > { %p2064_p7 = pnand %p2063_p5, %p2947_p2 }
 0x464   : > { %p2071_p10 = por %p2070_p8, %p2069_p6 }
 0x465   : > { %p2065_p4 = pneg %p2064_p7 }
 0x467   : > { %p2072_p13 = pnand %p2071_p10, %p2065_p4 }
 0x469   : > { %2075 = shalt.err (!%p2072_p13)
}
 0x46a   : > { %s2076_s15 = scalar_lea.hbm %s3025_s5, 128 }
 0x46b   : > { %p2077_p0 = scmp.ne.s32.totalorder %s3025_s5, %s2076_s15  ;;  %p2082_p11 = scmp.lt.u32.totalorder %s2076_s15, %s3025_s5 }
 0x46d   : > { %p2078_p1 = pnand %p2077_p0, %p2947_p2 }
 0x46f   : > { %p2079_p9 = pneg %p2078_p1 }
 0x471   : > { %p2084_p12 = pnand %p2082_p11, %p2079_p9 }
 0x473   : > { %2087 = shalt.err (!%p2084_p12)
}
 0x474   : > { %1837 = dma.vmem_to_hbm [thread:$0]  (%p2947_p2), %s1640_s10, 128, %s3025_s5, [#allocation8]  }
 0x475   : > { %s2088_s26 = scalar_lea.vmem %s2951_s22, 128  ;;  %p2095_p4 = scmp.lt.s32.totalorder %s2951_s22, %s2951_s22 }
 0x476   : > { %p2089_p3 = scmp.ne.s32.totalorder %s2951_s22, %s2088_s26  ;;  %p2096_p6 = scmp.lt.s32.totalorder %s2088_s26, %s2088_s26 }
 0x478   : > { %p2090_p5 = pnand %p2089_p3, %p2947_p2  ;;  %p2097_p8 = por %p2096_p6, %p2095_p4 }
 0x47a   : > { %p2091_p7 = pneg %p2090_p5 }
 0x47c   : > { %p2098_p10 = pnand %p2097_p8, %p2091_p7 }
 0x47e   : > { %2101 = shalt.err (!%p2098_p10)
}
 0x47f   : > { %s2102_s13 = scalar_lea.hbm %s3026_s6, 128 }
 0x480   : > { %p2103_p13 = scmp.ne.s32.totalorder %s3026_s6, %s2102_s13  ;;  %p2108_p9 = scmp.lt.u32.totalorder %s2102_s13, %s3026_s6 }
 0x482   : > { %p2104_p0 = pnand %p2103_p13, %p2947_p2 }
 0x484   : > { %p2105_p1 = pneg %p2104_p0 }
 0x486   : > { %p2110_p11 = pnand %p2108_p9, %p2105_p1 }
 0x488   : > { %2113 = shalt.err (!%p2110_p11)
}
 0x489   : > { %1839 = dma.vmem_to_hbm [thread:$0]  (%p2947_p2), %s2951_s22, 128, %s3026_s6, [#allocation13]  }
 0x48a   : > { %2147 = dma.done.wait (%p2947_p2), [#allocation8], 128  }
 0x48b   : > { %2149 = vsyncadd (%p2947_p2), [#allocation8], 4294967168 }
 0x48c   : > { %2151 = dma.done.wait (%p2947_p2), [#allocation13], 128  }
 0x48d   : > { %2153 = vsyncadd (%p2947_p2), [#allocation13], 4294967168 }
 0x48e PF: > { %s24_s28 = sadd.s32 1, %s2176_s28   ;;  %s3040_s23 = smov %s2160_s24 }
 0x48f   : > { %p21_p12 = scmp.ge.s32.totalorder %s24_s28, 4   ;;  %s3041_s24 = smov %s2164_s25 }
 0x490   : > { %s3042_s25 = smov %s2308_s9  ;;  %s3043_s26 = smov %s2172_s27 }
 0x491   : > { %s3044_s27 = smov %s3046_s16  ;;  %23 = sbr.rel (!%p21_p12) target bundleno = 9 (0x9), region = 104 }
 0x498   :  { %1669 = vsyncpa [#allocation7], 1 }
 0x499   :  { %1671 = vsyncpa [#allocation7 + $0x1], 1 }
 0x49a   :  { %1672 = vsyncpa [#allocation8], 1 }
 0x49b   :  { %1674 = vsyncpa [#allocation8 + $0x1], 1 }
 0x49c   :  { %1675 = vsyncpa [#allocation13], 1 }
 0x49d   :  { %1676 = vsyncpa [#allocation9], 1 }
 0x49e   :  { %1678 = vsyncpa [#allocation9 + $0x1], 1 }

</bundles_post_ra>
